<compile_context>
chip_gen: v7x
topology: tpu7x:2x2x1
jax: 0.10.0
libtpu: 0.0.40
codegen_flags: <defaults>
</compile_context>

<pallas_src>
import jax
import jax.numpy as jnp
from jax.experimental import pallas as pl
from jax.experimental.pallas import tpu as pltpu

EPS = 1e-12


def layernorm_kernel(x_ref, w_ref, b_ref, o_ref):
    x = x_ref[...]                                   # (tile_rows, H)
    if x.dtype != jnp.float32:
        x = x.astype(jnp.float32)

    mean = jnp.mean(x, axis=-1, keepdims=True)       # (tile_rows, 1)
    xc = x - mean
    var = jnp.mean(xc * xc, axis=-1, keepdims=True)  # biased var (torch LayerNorm)
    inv = jax.lax.rsqrt(var + EPS)                   # EUP slot -> effectively free

    w = w_ref[...]                                   # (1, H), broadcast over rows
    b = b_ref[...]
    if w.dtype != jnp.float32:
        w = w.astype(jnp.float32)
    if b.dtype != jnp.float32:
        b = b.astype(jnp.float32)

    o_ref[...] = (xc * inv * w + b).astype(o_ref.dtype)


def layernorm(x, weight, bias, *, tile_rows=None):
    """x: (B, S, H); weight/bias: (H,). LayerNorm over the last dim."""
    B, S, H = x.shape
    rows = B * S
    x2 = x.reshape(rows, H)
    w2 = weight.reshape(1, H)
    b2 = bias.reshape(1, H)

    if tile_rows is None:
        # Single grid step when the whole slab is small (overhead-bound regime).
        # For much larger inputs, pass tile_rows ~512-1024 (multiple of 8;
        # multiple of 16 if activations become bf16).
        tile_rows = rows
    assert rows % tile_rows == 0, "tile_rows must divide number of rows"
    assert tile_rows % 8 == 0, "tile_rows must respect the (8,128) sublane tile"

    out = pl.pallas_call(
        layernorm_kernel,
        out_shape=jax.ShapeDtypeStruct((rows, H), x.dtype),
        grid_spec=pltpu.PrefetchScalarGridSpec(
            num_scalar_prefetch=0,
            grid=(rows // tile_rows,),
            in_specs=[
                pl.BlockSpec((tile_rows, H), lambda i: (i, 0)),
                pl.BlockSpec((1, H), lambda i: (0, 0)),
                pl.BlockSpec((1, H), lambda i: (0, 0)),
            ],
            out_specs=pl.BlockSpec((tile_rows, H), lambda i: (i, 0)),
        ),
        compiler_params=pltpu.CompilerParams(
            dimension_semantics=("parallel",)
        ),
    )(x2, w2, b2)
    return out.reshape(B, S, H)


if __name__ == "__main__":
    key = jax.random.PRNGKey(0)
    B, S, H = 1, 384, 256
    x = jax.random.normal(key, (B, S, H), dtype=jnp.float32)

    # torch.nn.LayerNorm(elementwise_affine=True) default init: weight=1, bias=0.
    weight = jnp.ones((H,), dtype=jnp.float32)
    bias = jnp.zeros((H,), dtype=jnp.float32)

    y = layernorm(x, weight, bias)
    jax.block_until_ready(y)

    # Pure-JAX reference.
    mean = jnp.mean(x, axis=-1, keepdims=True)
    var = jnp.mean((x - mean) ** 2, axis=-1, keepdims=True)
    ref = (x - mean) * jax.lax.rsqrt(var + EPS) * weight + bias
    assert jnp.allclose(y, ref, atol=1e-5, rtol=1e-5), "mismatch vs reference"

    print("KERNEL_OK")
</pallas_src>

<mosaic_0001>
module attributes {stable_mosaic.version = 11 : i64} {
  func.func @layernorm_kernel(%arg0: i32, %arg1: memref<384x256xf32, #tpu.memory_space<vmem>>, %arg2: memref<1x256xf32, #tpu.memory_space<vmem>>, %arg3: memref<1x256xf32, #tpu.memory_space<vmem>>, %arg4: memref<384x256xf32, #tpu.memory_space<vmem>>) attributes {dimension_semantics = [#tpu.dimension_semantics<parallel>], iteration_bounds = array<i64: 1>, scalar_prefetch = 0 : i64, scratch_operands = 0 : i64, tpu.core_type = #tpu.core_type<tc>, window_params = [{transform_indices = @transform_0, window_bounds = array<i64: 384, 256>}, {pipeline_mode = #tpu.pipeline_mode<synchronous>, transform_indices = @transform_1, window_bounds = array<i64: 1, 256>}, {pipeline_mode = #tpu.pipeline_mode<synchronous>, transform_indices = @transform_2, window_bounds = array<i64: 1, 256>}, {transform_indices = @transform_3, window_bounds = array<i64: 384, 256>}]} {
    %c0 = arith.constant 0 : index
    %c0_0 = arith.constant 0 : index
    %0 = vector.load %arg1[%c0, %c0_0] : memref<384x256xf32, #tpu.memory_space<vmem>>, vector<384x256xf32>
    %cst = arith.constant dense<0.000000e+00> : vector<384xf32>
    %1 = vector.multi_reduction <add>, %0, %cst [1] : vector<384x256xf32> to vector<384xf32>
    %2 = vector.shape_cast %1 : vector<384xf32> to vector<384x1xf32>
    %cst_1 = arith.constant 2.560000e+02 : f32
    %3 = vector.broadcast %cst_1 : f32 to vector<384x1xf32>
    %4 = arith.divf %2, %3 : vector<384x1xf32>
    %5 = vector.broadcast %4 : vector<384x1xf32> to vector<384x256xf32>
    %6 = arith.subf %0, %5 : vector<384x256xf32>
    %7 = arith.mulf %6, %6 : vector<384x256xf32>
    %cst_2 = arith.constant dense<0.000000e+00> : vector<384xf32>
    %8 = vector.multi_reduction <add>, %7, %cst_2 [1] : vector<384x256xf32> to vector<384xf32>
    %9 = vector.shape_cast %8 : vector<384xf32> to vector<384x1xf32>
    %cst_3 = arith.constant 2.560000e+02 : f32
    %10 = vector.broadcast %cst_3 : f32 to vector<384x1xf32>
    %11 = arith.divf %9, %10 : vector<384x1xf32>
    %cst_4 = arith.constant 9.99999996E-13 : f32
    %12 = vector.broadcast %cst_4 : f32 to vector<384x1xf32>
    %13 = arith.addf %11, %12 : vector<384x1xf32>
    %14 = math.rsqrt %13 : vector<384x1xf32>
    %c0_5 = arith.constant 0 : index
    %c0_6 = arith.constant 0 : index
    %15 = vector.load %arg2[%c0_5, %c0_6] : memref<1x256xf32, #tpu.memory_space<vmem>>, vector<1x256xf32>
    %c0_7 = arith.constant 0 : index
    %c0_8 = arith.constant 0 : index
    %16 = vector.load %arg3[%c0_7, %c0_8] : memref<1x256xf32, #tpu.memory_space<vmem>>, vector<1x256xf32>
    %17 = vector.broadcast %14 : vector<384x1xf32> to vector<384x256xf32>
    %18 = arith.mulf %6, %17 : vector<384x256xf32>
    %19 = vector.broadcast %15 : vector<1x256xf32> to vector<384x256xf32>
    %20 = arith.mulf %18, %19 : vector<384x256xf32>
    %21 = vector.broadcast %16 : vector<1x256xf32> to vector<384x256xf32>
    %22 = arith.addf %20, %21 : vector<384x256xf32>
    %c0_9 = arith.constant 0 : index
    %c0_10 = arith.constant 0 : index
    %23 = vector.load %arg4[%c0_9, %c0_10] : memref<384x256xf32, #tpu.memory_space<vmem>>, vector<384x256xf32>
    tpu.vector_store %arg4[%c0_9, %c0_10], %22 {strides = array<i32>} : memref<384x256xf32, #tpu.memory_space<vmem>>, vector<384x256xf32>,
    return
  }
  func.func @transform_0(%arg0: i32) -> (i32, i32) {
    %c0_i32 = arith.constant 0 : i32
    %c0_i32_0 = arith.constant 0 : i32
    return %arg0, %c0_i32 : i32, i32
  }
  func.func @transform_1(%arg0: i32) -> (i32, i32) {
    %c0_i32 = arith.constant 0 : i32
    %c0_i32_0 = arith.constant 0 : i32
    %c0_i32_1 = arith.constant 0 : i32
    return %c0_i32, %c0_i32_0 : i32, i32
  }
  func.func @transform_2(%arg0: i32) -> (i32, i32) {
    %c0_i32 = arith.constant 0 : i32
    %c0_i32_0 = arith.constant 0 : i32
    %c0_i32_1 = arith.constant 0 : i32
    return %c0_i32, %c0_i32_0 : i32, i32
  }
  func.func @transform_3(%arg0: i32) -> (i32, i32) {
    %c0_i32 = arith.constant 0 : i32
    %c0_i32_0 = arith.constant 0 : i32
    return %arg0, %c0_i32 : i32, i32
  }
}

</mosaic_0001>

<bundles_post_ra>
// kernel: tpu_custom_call.1
= control target key start
LH: loop header
LB: loop body
LE: loop exit
PB: predicated region body
PF: predicated region fallthrough
CT: control target
= control target key end

     0   :  { %8 = vsyncpa [#allocation3], 0  ;;  %s2516_s0 = inlined_call_operand.hbm [shape: f32[384,256], index: 0, kind: input, shape index: {}]   ;;  %s2517_s1 = inlined_call_operand.vmem [shape: f32[1,256], index: 1, kind: input, shape index: {}]   ;;  %s2518_s2 = inlined_call_operand.vmem [shape: f32[1,256], index: 2, kind: input, shape index: {}]   ;;  %s2519_s3 = inlined_call_operand.hbm [shape: f32[384,256], index: 3, kind: output, shape index: {}]  }
   0x1   :  { %9 = vsyncpa [#allocation4], 0  ;;  %s1371_s12 = smov [#allocation2]   ;;  %s1323_s16 = scalar_lea.hbm %s2516_s0, 12288 }
   0x2   :  { %s15_s13 = sshll.u32 %s1371_s12, 4  ;;  %p1324_p0 = scmp.ne.s32.totalorder %s2516_s0, %s1323_s16  ;;  %s16_s13 = int_to_ptr.vmem [resolvable:$true] %s15_s13 }
   0x3   :  { %p1327_p1 = scmp.lt.u32.totalorder %s1323_s16, %s2516_s0 }
   0x5   :  { %p1329_p2 = pnand %p1327_p1, %p1324_p0 }
   0x7   :  { %1332 = shalt.err (!%p1329_p2)
}
   0x8   :  { %s1333_s21 = scalar_lea.vmem %s16_s13, 12288  ;;  %p1338_p4 = scmp.lt.s32.totalorder %s16_s13, %s16_s13 }
   0x9   :  { %p1334_p3 = scmp.ne.s32.totalorder %s16_s13, %s1333_s21  ;;  %p1339_p5 = scmp.lt.s32.totalorder %s1333_s21, %s1333_s21 }
   0xb   :  { %p1340_p6 = por %p1339_p5, %p1338_p4 }
   0xd   :  { %p1341_p7 = pnand %p1340_p6, %p1334_p3 }
   0xf   :  { %1344 = shalt.err (!%p1341_p7)
}
  0x10   :  { %s1372_s22 = smov 256   ;;  %s1373_s23 = smov 16  }
  0x11   :  { %21 = dma.hbm_to_vmem [thread:$0]  %s2516_s0, 12288, %s16_s13, [#allocation3], %s1372_s22, %s1372_s22, %s1373_s23  }
  0x12   :  { %1367 = dma.done.wait [#allocation3], 12288  }
  0x13   :  { %1368 = vsyncadd [#allocation3], 4294955008  ;;  %v1410_v0 = vld [vmem:[#allocation2] sm:$0xff]  ;;  %v1412_v1 = vld [vmem:[#allocation2 + $0x8] sm:$0xff] }
  0x14   :  { %v1414_v2 = vld [vmem:[#allocation2 + $0x20] sm:$0xff]  ;;  %v125_v3 = vadd.f32 %v1412_v1, %v1410_v0  ;;  %v1418_v4 = vld [vmem:[#allocation2 + $0x28] sm:$0xff]  ;;  %v1420_v5 = vld [vmem:[#allocation2 + $0x10] sm:$0xff] }
  0x15   :  { %v1422_v6 = vld [vmem:[#allocation2 + $0x18] sm:$0xff]  ;;  %v131_v7 = vadd.f32 %v1418_v4, %v1414_v2  ;;  %v1426_v8 = vld [vmem:[#allocation2 + $0x30] sm:$0xff]  ;;  %v1434_v12 = vld [vmem:[#allocation2 + $0x40] sm:$0xff] }
  0x16   :  { %v1428_v9 = vld [vmem:[#allocation2 + $0x38] sm:$0xff]  ;;  %126 = vadd.xlane.f32.xlu0 %v125_v3  ;;  %v128_v10 = vadd.f32 %v1422_v6, %v1420_v5  ;;  %v1436_v13 = vld [vmem:[#allocation2 + $0x48] sm:$0xff]  ;;  %v1438_v14 = vld [vmem:[#allocation2 + $0x50] sm:$0xff] }
  0x17   :  { %132 = vadd.xlane.f32.xlu1 %v131_v7  ;;  %v134_v11 = vadd.f32 %v1428_v9, %v1426_v8  ;;  %v1440_v15 = vld [vmem:[#allocation2 + $0x58] sm:$0xff]  ;;  %v137_v16 = vadd.f32 %v1436_v13, %v1434_v12  ;;  %v1446_v18 = vld [vmem:[#allocation2 + $0x60] sm:$0xff]  ;;  %v1448_v19 = vld [vmem:[#allocation2 + $0x68] sm:$0xff] }
  0x18   :  { %v140_v17 = vadd.f32 %v1440_v15, %v1438_v14  ;;  %v1450_v20 = vld [vmem:[#allocation2 + $0x70] sm:$0xff]  ;;  %v1452_v21 = vld [vmem:[#allocation2 + $0x78] sm:$0xff]  ;;  %v143_v22 = vadd.f32 %v1448_v19, %v1446_v18  ;;  %v1458_v24 = vld [vmem:[#allocation2 + $0x80] sm:$0xff] }
  0x19   :  { %v146_v23 = vadd.f32 %v1452_v21, %v1450_v20  ;;  %v1460_v25 = vld [vmem:[#allocation2 + $0x88] sm:$0xff]  ;;  %v1462_v26 = vld [vmem:[#allocation2 + $0x90] sm:$0xff]  ;;  %v1464_v27 = vld [vmem:[#allocation2 + $0x98] sm:$0xff] }
  0x1a   :  { %129 = vadd.xlane.f32.xlu0 %v128_v10  ;;  %v149_v28 = vadd.f32 %v1460_v25, %v1458_v24  ;;  %v152_v29 = vadd.f32 %v1464_v27, %v1462_v26  ;;  %v1470_v30 = vld [vmem:[#allocation2 + $0xa0] sm:$0xff]  ;;  %v1472_v31 = vld [vmem:[#allocation2 + $0xa8] sm:$0xff]  ;;  %v1474_v32 = vld [vmem:[#allocation2 + $0xb0] sm:$0xff] }
  0x1b   :  { %135 = vadd.xlane.f32.xlu1 %v134_v11  ;;  %v1476_v33 = vld [vmem:[#allocation2 + $0xb8] sm:$0xff]  ;;  %v155_v34 = vadd.f32 %v1472_v31, %v1470_v30  ;;  %v1482_v36 = vld [vmem:[#allocation2 + $0xc0] sm:$0xff]  ;;  %v1484_v37 = vld [vmem:[#allocation2 + $0xc8] sm:$0xff] }
  0x1c   :  { %v158_v35 = vadd.f32 %v1476_v33, %v1474_v32  ;;  %v1486_v38 = vld [vmem:[#allocation2 + $0xd0] sm:$0xff]  ;;  %v1488_v39 = vld [vmem:[#allocation2 + $0xd8] sm:$0xff]  ;;  %v161_v40 = vadd.f32 %v1484_v37, %v1482_v36  ;;  %v1494_v42 = vld [vmem:[#allocation2 + $0xe0] sm:$0xff] }
  0x1d   :  { %v164_v41 = vadd.f32 %v1488_v39, %v1486_v38  ;;  %v1496_v43 = vld [vmem:[#allocation2 + $0xe8] sm:$0xff]  ;;  %v1498_v44 = vld [vmem:[#allocation2 + $0xf0] sm:$0xff]  ;;  %v1500_v45 = vld [vmem:[#allocation2 + $0xf8] sm:$0xff] }
  0x1e   :  { %138 = vadd.xlane.f32.xlu0 %v137_v16  ;;  %v167_v46 = vadd.f32 %v1496_v43, %v1494_v42  ;;  %v170_v47 = vadd.f32 %v1500_v45, %v1498_v44  ;;  %v1506_v48 = vld [vmem:[#allocation2 + $0x100] sm:$0xff]  ;;  %v1508_v49 = vld [vmem:[#allocation2 + $0x108] sm:$0xff]  ;;  %v1510_v50 = vld [vmem:[#allocation2 + $0x110] sm:$0xff] }
  0x1f   :  { %141 = vadd.xlane.f32.xlu1 %v140_v17  ;;  %v1512_v51 = vld [vmem:[#allocation2 + $0x118] sm:$0xff]  ;;  %v173_v52 = vadd.f32 %v1508_v49, %v1506_v48  ;;  %v1518_v54 = vld [vmem:[#allocation2 + $0x120] sm:$0xff]  ;;  %v1520_v55 = vld [vmem:[#allocation2 + $0x128] sm:$0xff] }
  0x20   :  { %v176_v53 = vadd.f32 %v1512_v51, %v1510_v50  ;;  %v1522_v56 = vld [vmem:[#allocation2 + $0x130] sm:$0xff]  ;;  %v1524_v57 = vld [vmem:[#allocation2 + $0x138] sm:$0xff]  ;;  %v179_v58 = vadd.f32 %v1520_v55, %v1518_v54  ;;  %v1530_v60 = vld [vmem:[#allocation2 + $0x140] sm:$0xff] }
  0x21   :  { %v182_v59 = vadd.f32 %v1524_v57, %v1522_v56  ;;  %v1532_v61 = vld [vmem:[#allocation2 + $0x148] sm:$0xff]  ;;  %v1534_v62 = vld [vmem:[#allocation2 + $0x150] sm:$0xff]  ;;  %v1536_v63 = vld [vmem:[#allocation2 + $0x158] sm:$0xff] }
  0x22   :  { %144 = vadd.xlane.f32.xlu0 %v143_v22  ;;  %v185_v3 = vadd.f32 %v1532_v61, %v1530_v60  ;;  %v188_v7 = vadd.f32 %v1536_v63, %v1534_v62  ;;  %v1542_v10 = vld [vmem:[#allocation2 + $0x160] sm:$0xff]  ;;  %v1544_v11 = vld [vmem:[#allocation2 + $0x168] sm:$0xff]  ;;  %v1546_v16 = vld [vmem:[#allocation2 + $0x170] sm:$0xff] }
  0x23   :  { %147 = vadd.xlane.f32.xlu1 %v146_v23  ;;  %v1548_v17 = vld [vmem:[#allocation2 + $0x178] sm:$0xff]  ;;  %v191_v22 = vadd.f32 %v1544_v11, %v1542_v10 }
  0x24   :  { %v194_v23 = vadd.f32 %v1548_v17, %v1546_v16 }
  0x26   :  { %150 = vadd.xlane.f32.xlu0 %v149_v28  ;;  %v1554_v28 = vld [vmem:[#allocation2 + $0x180] sm:$0xff] }
  0x27   :  { %153 = vadd.xlane.f32.xlu1 %v152_v29  ;;  %v1556_v29 = vld [vmem:[#allocation2 + $0x188] sm:$0xff] }
  0x2a   :  { %156 = vadd.xlane.f32.xlu0 %v155_v34  ;;  %v1558_v34 = vld [vmem:[#allocation2 + $0x190] sm:$0xff] }
  0x2b   :  { %159 = vadd.xlane.f32.xlu1 %v158_v35  ;;  %2620 = vst [vmem:[#allocation8_spill] sm:$0xff] %v1558_v34  ;;  %v1560_v35 = vld [vmem:[#allocation2 + $0x198] sm:$0xff] }
  0x2c   :  { %2621 = vst [vmem:[#allocation9_spill] sm:$0xff] %v1560_v35 }
  0x2e   :  { %162 = vadd.xlane.f32.xlu0 %v161_v40  ;;  %v197_v40 = vadd.f32 %v1556_v29, %v1554_v28 }
  0x2f   :  { %165 = vadd.xlane.f32.xlu1 %v164_v41  ;;  %v200_v41 = vadd.f32 %v1560_v35, %v1558_v34 }
  0x32   :  { %168 = vadd.xlane.f32.xlu0 %v167_v46  ;;  %v1566_v46 = vld [vmem:[#allocation2 + $0x1a0] sm:$0xff] }
  0x33   :  { %171 = vadd.xlane.f32.xlu1 %v170_v47  ;;  %2622 = vst [vmem:[#allocation10_spill] sm:$0xff] %v1566_v46  ;;  %v1568_v47 = vld [vmem:[#allocation2 + $0x1a8] sm:$0xff] }
  0x34   :  { %2623 = vst [vmem:[#allocation11_spill] sm:$0xff] %v1568_v47 }
  0x36   :  { %174 = vadd.xlane.f32.xlu0 %v173_v52  ;;  %v1570_v52 = vld [vmem:[#allocation2 + $0x1b0] sm:$0xff] }
  0x37   :  { %177 = vadd.xlane.f32.xlu1 %v176_v53  ;;  %2624 = vst [vmem:[#allocation12_spill] sm:$0xff] %v1570_v52  ;;  %v1572_v53 = vld [vmem:[#allocation2 + $0x1b8] sm:$0xff] }
  0x38   :  { %2625 = vst [vmem:[#allocation13_spill] sm:$0xff] %v1572_v53 }
  0x3a   :  { %180 = vadd.xlane.f32.xlu0 %v179_v58  ;;  %v203_v58 = vadd.f32 %v1568_v47, %v1566_v46  ;;  %v1592_v47 = vld [vmem:[#allocation2 + $0x1e8] sm:$0xff] }
  0x3b   :  { %183 = vadd.xlane.f32.xlu1 %v182_v59  ;;  %v206_v59 = vadd.f32 %v1572_v53, %v1570_v52  ;;  %2631 = vst [vmem:[#allocation19_spill] sm:$0xff] %v1592_v47  ;;  %v1594_v53 = vld [vmem:[#allocation2 + $0x1f0] sm:$0xff]  ;;  %v1596_v52 = vld [vmem:[#allocation2 + $0x1f8] sm:$0xff] }
  0x3c   :  { %2632 = vst [vmem:[#allocation20_spill] sm:$0xff] %v1594_v53  ;;  %2633 = vst [vmem:[#allocation21_spill] sm:$0xff] %v1596_v52 }
  0x3e   :  { %186 = vadd.xlane.f32.xlu0 %v185_v3  ;;  %v1578_v3 = vld [vmem:[#allocation2 + $0x1c0] sm:$0xff] }
  0x3f   :  { %189 = vadd.xlane.f32.xlu1 %v188_v7  ;;  %2626 = vst [vmem:[#allocation14_spill] sm:$0xff] %v1578_v3  ;;  %v1580_v7 = vld [vmem:[#allocation2 + $0x1c8] sm:$0xff] }
  0x40   :  { %2627 = vst [vmem:[#allocation15_spill] sm:$0xff] %v1580_v7  ;;  %v209_v35 = vadd.f32 %v1580_v7, %v1578_v3  ;;  %v1604_v7 = vld [vmem:[#allocation2 + $0x208] sm:$0xff] }
  0x41   :  { %2635 = vst [vmem:[#allocation23_spill] sm:$0xff] %v1604_v7 }
  0x42   :  { %192 = vadd.xlane.f32.xlu0 %v191_v22  ;;  %v1582_v22 = vld [vmem:[#allocation2 + $0x1d0] sm:$0xff] }
  0x43   :  { %195 = vadd.xlane.f32.xlu1 %v194_v23  ;;  %2628 = vst [vmem:[#allocation16_spill] sm:$0xff] %v1582_v22  ;;  %v1584_v23 = vld [vmem:[#allocation2 + $0x1d8] sm:$0xff] }
  0x44   :  { %2629 = vst [vmem:[#allocation17_spill] sm:$0xff] %v1584_v23 }
  0x46   :  { %198 = vadd.xlane.f32.xlu0 %v197_v40  ;;  %v212_v40 = vadd.f32 %v1584_v23, %v1582_v22  ;;  %v1606_v23 = vld [vmem:[#allocation2 + $0x210] sm:$0xff]  ;;  %v1608_v22 = vld [vmem:[#allocation2 + $0x218] sm:$0xff] }
  0x47   :  { %201 = vadd.xlane.f32.xlu1 %v200_v41  ;;  %v1590_v41 = vld [vmem:[#allocation2 + $0x1e0] sm:$0xff]  ;;  %2636 = vst [vmem:[#allocation24_spill] sm:$0xff] %v1606_v23  ;;  %2637 = vst [vmem:[#allocation25_spill] sm:$0xff] %v1608_v22 }
  0x48   :  { %2630 = vst [vmem:[#allocation18_spill] sm:$0xff] %v1590_v41  ;;  %v215_v46 = vadd.f32 %v1592_v47, %v1590_v41  ;;  %v1616_v47 = vld [vmem:[#allocation2 + $0x228] sm:$0xff] }
  0x49   :  { %2639 = vst [vmem:[#allocation27_spill] sm:$0xff] %v1616_v47 }
  0x4a   :  { %204 = vadd.xlane.f32.xlu0 %v203_v58  ;;  %v218_v58 = vadd.f32 %v1596_v52, %v1594_v53  ;;  %v1618_v52 = vld [vmem:[#allocation2 + $0x230] sm:$0xff]  ;;  %v1620_v53 = vld [vmem:[#allocation2 + $0x238] sm:$0xff] }
  0x4b   :  { %207 = vadd.xlane.f32.xlu1 %v206_v59  ;;  %v1602_v59 = vld [vmem:[#allocation2 + $0x200] sm:$0xff]  ;;  %2640 = vst [vmem:[#allocation28_spill] sm:$0xff] %v1618_v52  ;;  %2641 = vst [vmem:[#allocation29_spill] sm:$0xff] %v1620_v53 }
  0x4c   :  { %2634 = vst [vmem:[#allocation22_spill] sm:$0xff] %v1602_v59  ;;  %v221_v3 = vadd.f32 %v1604_v7, %v1602_v59  ;;  %v1628_v7 = vld [vmem:[#allocation2 + $0x248] sm:$0xff] }
  0x4d   :  { %2643 = vst [vmem:[#allocation31_spill] sm:$0xff] %v1628_v7 }
  0x4e   :  { %210 = vadd.xlane.f32.xlu0 %v209_v35  ;;  %v224_v35 = vadd.f32 %v1608_v22, %v1606_v23  ;;  %v1630_v22 = vld [vmem:[#allocation2 + $0x250] sm:$0xff]  ;;  %v1632_v23 = vld [vmem:[#allocation2 + $0x258] sm:$0xff] }
  0x4f   :  { %213 = vadd.xlane.f32.xlu1 %v212_v40  ;;  %v1614_v40 = vld [vmem:[#allocation2 + $0x220] sm:$0xff]  ;;  %2644 = vst [vmem:[#allocation32_spill] sm:$0xff] %v1630_v22  ;;  %2645 = vst [vmem:[#allocation33_spill] sm:$0xff] %v1632_v23 }
  0x50   :  { %2638 = vst [vmem:[#allocation26_spill] sm:$0xff] %v1614_v40  ;;  %v227_v41 = vadd.f32 %v1616_v47, %v1614_v40  ;;  %v1640_v47 = vld [vmem:[#allocation2 + $0x268] sm:$0xff] }
  0x51   :  { %2647 = vst [vmem:[#allocation35_spill] sm:$0xff] %v1640_v47 }
  0x52   :  { %216 = vadd.xlane.f32.xlu0 %v215_v46  ;;  %v230_v46 = vadd.f32 %v1620_v53, %v1618_v52  ;;  %v1642_v53 = vld [vmem:[#allocation2 + $0x270] sm:$0xff]  ;;  %v1644_v52 = vld [vmem:[#allocation2 + $0x278] sm:$0xff] }
  0x53   :  { %219 = vadd.xlane.f32.xlu1 %v218_v58  ;;  %v1626_v58 = vld [vmem:[#allocation2 + $0x240] sm:$0xff]  ;;  %2648 = vst [vmem:[#allocation36_spill] sm:$0xff] %v1642_v53  ;;  %2649 = vst [vmem:[#allocation37_spill] sm:$0xff] %v1644_v52 }
  0x54   :  { %2642 = vst [vmem:[#allocation30_spill] sm:$0xff] %v1626_v58  ;;  %v233_v59 = vadd.f32 %v1628_v7, %v1626_v58  ;;  %v1652_v7 = vld [vmem:[#allocation2 + $0x288] sm:$0xff] }
  0x55   :  { %2651 = vst [vmem:[#allocation39_spill] sm:$0xff] %v1652_v7 }
  0x56   :  { %222 = vadd.xlane.f32.xlu0 %v221_v3  ;;  %v236_v3 = vadd.f32 %v1632_v23, %v1630_v22  ;;  %v1654_v23 = vld [vmem:[#allocation2 + $0x290] sm:$0xff]  ;;  %v1656_v22 = vld [vmem:[#allocation2 + $0x298] sm:$0xff] }
  0x57   :  { %225 = vadd.xlane.f32.xlu1 %v224_v35  ;;  %v1638_v35 = vld [vmem:[#allocation2 + $0x260] sm:$0xff]  ;;  %2652 = vst [vmem:[#allocation40_spill] sm:$0xff] %v1654_v23  ;;  %2653 = vst [vmem:[#allocation41_spill] sm:$0xff] %v1656_v22 }
  0x58   :  { %2646 = vst [vmem:[#allocation34_spill] sm:$0xff] %v1638_v35  ;;  %v239_v40 = vadd.f32 %v1640_v47, %v1638_v35  ;;  %v1664_v47 = vld [vmem:[#allocation2 + $0x2a8] sm:$0xff] }
  0x59   :  { %2655 = vst [vmem:[#allocation43_spill] sm:$0xff] %v1664_v47 }
  0x5a   :  { %228 = vadd.xlane.f32.xlu0 %v227_v41  ;;  %v242_v41 = vadd.f32 %v1644_v52, %v1642_v53  ;;  %v1666_v52 = vld [vmem:[#allocation2 + $0x2b0] sm:$0xff]  ;;  %v1668_v53 = vld [vmem:[#allocation2 + $0x2b8] sm:$0xff] }
  0x5b   :  { %231 = vadd.xlane.f32.xlu1 %v230_v46  ;;  %v1650_v46 = vld [vmem:[#allocation2 + $0x280] sm:$0xff]  ;;  %2656 = vst [vmem:[#allocation44_spill] sm:$0xff] %v1666_v52  ;;  %2657 = vst [vmem:[#allocation45_spill] sm:$0xff] %v1668_v53 }
  0x5c   :  { %2650 = vst [vmem:[#allocation38_spill] sm:$0xff] %v1650_v46  ;;  %v245_v58 = vadd.f32 %v1652_v7, %v1650_v46  ;;  %v1676_v7 = vld [vmem:[#allocation2 + $0x2c8] sm:$0xff] }
  0x5d   :  { %2659 = vst [vmem:[#allocation47_spill] sm:$0xff] %v1676_v7 }
  0x5e   :  { %234 = vadd.xlane.f32.xlu0 %v233_v59  ;;  %v248_v59 = vadd.f32 %v1656_v22, %v1654_v23  ;;  %v1678_v22 = vld [vmem:[#allocation2 + $0x2d0] sm:$0xff]  ;;  %v1680_v23 = vld [vmem:[#allocation2 + $0x2d8] sm:$0xff] }
  0x5f   :  { %237 = vadd.xlane.f32.xlu1 %v236_v3  ;;  %v1662_v3 = vld [vmem:[#allocation2 + $0x2a0] sm:$0xff]  ;;  %2660 = vst [vmem:[#allocation48_spill] sm:$0xff] %v1678_v22  ;;  %2661 = vst [vmem:[#allocation49_spill] sm:$0xff] %v1680_v23 }
  0x60   :  { %2654 = vst [vmem:[#allocation42_spill] sm:$0xff] %v1662_v3  ;;  %v251_v35 = vadd.f32 %v1664_v47, %v1662_v3  ;;  %v1688_v47 = vld [vmem:[#allocation2 + $0x2e8] sm:$0xff] }
  0x61   :  { %2662 = vst [vmem:[#allocation50_spill] sm:$0xff] %v1688_v47 }
  0x62   :  { %240 = vadd.xlane.f32.xlu0 %v239_v40  ;;  %v254_v40 = vadd.f32 %v1668_v53, %v1666_v52  ;;  %v1690_v53 = vld [vmem:[#allocation2 + $0x2f0] sm:$0xff]  ;;  %v1692_v52 = vld [vmem:[#allocation2 + $0x2f8] sm:$0xff] }
  0x63   :  { %243 = vadd.xlane.f32.xlu1 %v242_v41  ;;  %v1674_v41 = vld [vmem:[#allocation2 + $0x2c0] sm:$0xff]  ;;  %2663 = vst [vmem:[#allocation51_spill] sm:$0xff] %v1692_v52 }
  0x64   :  { %2658 = vst [vmem:[#allocation46_spill] sm:$0xff] %v1674_v41  ;;  %v257_v46 = vadd.f32 %v1676_v7, %v1674_v41 }
  0x66   :  { %246 = vadd.xlane.f32.xlu0 %v245_v58  ;;  %v260_v58 = vadd.f32 %v1680_v23, %v1678_v22 }
  0x67   :  { %249 = vadd.xlane.f32.xlu1 %v248_v59  ;;  %v1686_v59 = vld [vmem:[#allocation2 + $0x2e0] sm:$0xff] }
  0x68   :  { %v263_v3 = vadd.f32 %v1688_v47, %v1686_v59 }
  0x6a   :  { %252 = vadd.xlane.f32.xlu0 %v251_v35  ;;  %v266_v35 = vadd.f32 %v1692_v52, %v1690_v53 }
  0x6b   :  { %255 = vadd.xlane.f32.xlu1 %v254_v40 }
  0x6e   :  { %258 = vadd.xlane.f32.xlu0 %v257_v46 }
  0x6f   :  { %261 = vadd.xlane.f32.xlu1 %v260_v58 }
  0x72   :  { %264 = vadd.xlane.f32.xlu0 %v263_v3 }
  0x73   :  { %267 = vadd.xlane.f32.xlu1 %v266_v35 }
  0xa3   :  { %v127_v40 = vpop.xlane.xlu0 %126 }
  0xa4   :  { %v270_v23 = vmul.f32 0.00390625, %v127_v40  ;;  %v133_v22 = vpop.xlane.xlu1 %132 }
  0xa5   :  { %v272_v7 = vmul.f32 0.00390625, %v133_v22 }
  0xa6   :  { %v1699_v41 = vsub.f32 %v1410_v0, %v270_v23  ;;  %v1702_v34 = vsub.f32 %v1412_v1, %v270_v23 }
  0xa7   :  { %v1705_v46 = vsub.f32 %v1414_v2, %v272_v7  ;;  %v1708_v58 = vsub.f32 %v1418_v4, %v272_v7  ;;  %v130_v47 = vpop.xlane.xlu0 %129 }
  0xa8   :  { %2664 = vst [vmem:[#allocation52_spill] sm:$0xff] %v1699_v41  ;;  %2665 = vst [vmem:[#allocation53_spill] sm:$0xff] %v1702_v34  ;;  %v271_v52 = vmul.f32 0.00390625, %v130_v47  ;;  %v136_v3 = vpop.xlane.xlu1 %135  ;;  %v414_v35 = vmul.f32 %v1699_v41, %v1699_v41  ;;  %v415_v22 = vmul.f32 %v1702_v34, %v1702_v34 }
  0xa9   :  { %2666 = vst [vmem:[#allocation54_spill] sm:$0xff] %v1705_v46  ;;  %2667 = vst [vmem:[#allocation55_spill] sm:$0xff] %v1708_v58  ;;  %v273_v0 = vmul.f32 0.00390625, %v136_v3  ;;  %v418_v1 = vmul.f32 %v1705_v46, %v1705_v46  ;;  %v419_v2 = vmul.f32 %v1708_v58, %v1708_v58 }
  0xaa   :  { %v1719_v23 = vsub.f32 %v1420_v5, %v271_v52  ;;  %v1722_v4 = vsub.f32 %v1422_v6, %v271_v52  ;;  %v510_v47 = vadd.f32 %v415_v22, %v414_v35 }
  0xab   :  { %v1725_v7 = vsub.f32 %v1426_v8, %v273_v0  ;;  %v1728_v40 = vsub.f32 %v1428_v9, %v273_v0  ;;  %v139_v3 = vpop.xlane.xlu0 %138  ;;  %v516_v41 = vadd.f32 %v419_v2, %v418_v1 }
  0xac   :  { %v274_v34 = vmul.f32 0.00390625, %v139_v3  ;;  %511 = vadd.xlane.f32.xlu0 %v510_v47  ;;  %v142_v46 = vpop.xlane.xlu1 %141  ;;  %v416_v58 = vmul.f32 %v1719_v23, %v1719_v23  ;;  %v417_v5 = vmul.f32 %v1722_v4, %v1722_v4 }
  0xad   :  { %v275_v6 = vmul.f32 0.00390625, %v142_v46  ;;  %v420_v52 = vmul.f32 %v1725_v7, %v1725_v7  ;;  %v421_v8 = vmul.f32 %v1728_v40, %v1728_v40 }
  0xae   :  { %v1739_v9 = vsub.f32 %v1434_v12, %v274_v34  ;;  %v1742_v35 = vsub.f32 %v1436_v13, %v274_v34  ;;  %v513_v22 = vadd.f32 %v417_v5, %v416_v58 }
  0xaf   :  { %v1745_v0 = vsub.f32 %v1438_v14, %v275_v6  ;;  %v1748_v1 = vsub.f32 %v1440_v15, %v275_v6  ;;  %v145_v46 = vpop.xlane.xlu0 %144  ;;  %v519_v3 = vadd.f32 %v421_v8, %v420_v52 }
  0xb0   :  { %v276_v2 = vmul.f32 0.00390625, %v145_v46  ;;  %517 = vadd.xlane.f32.xlu0 %v516_v41  ;;  %514 = vadd.xlane.f32.xlu1 %v513_v22  ;;  %v148_v47 = vpop.xlane.xlu1 %147  ;;  %v422_v12 = vmul.f32 %v1739_v9, %v1739_v9  ;;  %v423_v13 = vmul.f32 %v1742_v35, %v1742_v35 }
  0xb1   :  { %v277_v34 = vmul.f32 0.00390625, %v148_v47  ;;  %v424_v14 = vmul.f32 %v1745_v0, %v1745_v0  ;;  %v425_v15 = vmul.f32 %v1748_v1, %v1748_v1 }
  0xb2   :  { %v1759_v58 = vsub.f32 %v1446_v18, %v276_v2  ;;  %v1762_v41 = vsub.f32 %v1448_v19, %v276_v2  ;;  %v522_v5 = vadd.f32 %v423_v13, %v422_v12 }
  0xb3   :  { %v1765_v6 = vsub.f32 %v1450_v20, %v277_v34  ;;  %v1768_v52 = vsub.f32 %v1452_v21, %v277_v34  ;;  %v151_v8 = vpop.xlane.xlu0 %150  ;;  %v525_v47 = vadd.f32 %v425_v15, %v424_v14 }
  0xb4   :  { %v278_v22 = vmul.f32 0.00390625, %v151_v8  ;;  %520 = vadd.xlane.f32.xlu1 %v519_v3  ;;  %523 = vadd.xlane.f32.xlu0 %v522_v5  ;;  %v154_v46 = vpop.xlane.xlu1 %153  ;;  %v426_v18 = vmul.f32 %v1759_v58, %v1759_v58  ;;  %v427_v19 = vmul.f32 %v1762_v41, %v1762_v41 }
  0xb5   :  { %v279_v2 = vmul.f32 0.00390625, %v154_v46  ;;  %v428_v20 = vmul.f32 %v1765_v6, %v1765_v6  ;;  %v429_v21 = vmul.f32 %v1768_v52, %v1768_v52 }
  0xb6   :  { %v1779_v12 = vsub.f32 %v1458_v24, %v278_v22  ;;  %v1782_v3 = vsub.f32 %v1460_v25, %v278_v22  ;;  %v528_v13 = vadd.f32 %v427_v19, %v426_v18 }
  0xb7   :  { %v1785_v34 = vsub.f32 %v1462_v26, %v279_v2  ;;  %v1788_v14 = vsub.f32 %v1464_v27, %v279_v2  ;;  %v157_v15 = vpop.xlane.xlu0 %156  ;;  %v531_v46 = vadd.f32 %v429_v21, %v428_v20 }
  0xb8   :  { %v280_v5 = vmul.f32 0.00390625, %v157_v15  ;;  %526 = vadd.xlane.f32.xlu1 %v525_v47  ;;  %529 = vadd.xlane.f32.xlu0 %v528_v13  ;;  %v160_v8 = vpop.xlane.xlu1 %159  ;;  %v430_v24 = vmul.f32 %v1779_v12, %v1779_v12  ;;  %v431_v25 = vmul.f32 %v1782_v3, %v1782_v3 }
  0xb9   :  { %v281_v22 = vmul.f32 0.00390625, %v160_v8  ;;  %v432_v26 = vmul.f32 %v1785_v34, %v1785_v34  ;;  %v433_v27 = vmul.f32 %v1788_v14, %v1788_v14 }
  0xba   :  { %v1799_v18 = vsub.f32 %v1470_v30, %v280_v5  ;;  %v1802_v47 = vsub.f32 %v1472_v31, %v280_v5  ;;  %v534_v19 = vadd.f32 %v431_v25, %v430_v24 }
  0xbb   :  { %v1805_v2 = vsub.f32 %v1474_v32, %v281_v22  ;;  %v1808_v20 = vsub.f32 %v1476_v33, %v281_v22  ;;  %v163_v21 = vpop.xlane.xlu0 %162  ;;  %v537_v8 = vadd.f32 %v433_v27, %v432_v26 }
  0xbc   :  { %v282_v13 = vmul.f32 0.00390625, %v163_v21  ;;  %532 = vadd.xlane.f32.xlu1 %v531_v46  ;;  %535 = vadd.xlane.f32.xlu0 %v534_v19  ;;  %v166_v15 = vpop.xlane.xlu1 %165  ;;  %v434_v30 = vmul.f32 %v1799_v18, %v1799_v18  ;;  %v435_v31 = vmul.f32 %v1802_v47, %v1802_v47 }
  0xbd   :  { %v283_v5 = vmul.f32 0.00390625, %v166_v15  ;;  %v436_v32 = vmul.f32 %v1805_v2, %v1805_v2  ;;  %v437_v33 = vmul.f32 %v1808_v20, %v1808_v20 }
  0xbe   :  { %v1819_v24 = vsub.f32 %v1482_v36, %v282_v13  ;;  %v1822_v46 = vsub.f32 %v1484_v37, %v282_v13  ;;  %v540_v25 = vadd.f32 %v435_v31, %v434_v30 }
  0xbf   :  { %v1825_v22 = vsub.f32 %v1486_v38, %v283_v5  ;;  %v1828_v26 = vsub.f32 %v1488_v39, %v283_v5  ;;  %v169_v27 = vpop.xlane.xlu0 %168  ;;  %v543_v15 = vadd.f32 %v437_v33, %v436_v32 }
  0xc0   :  { %v284_v19 = vmul.f32 0.00390625, %v169_v27  ;;  %538 = vadd.xlane.f32.xlu1 %v537_v8  ;;  %541 = vadd.xlane.f32.xlu0 %v540_v25  ;;  %v172_v21 = vpop.xlane.xlu1 %171  ;;  %v438_v36 = vmul.f32 %v1819_v24, %v1819_v24  ;;  %v439_v37 = vmul.f32 %v1822_v46, %v1822_v46 }
  0xc1   :  { %v285_v13 = vmul.f32 0.00390625, %v172_v21  ;;  %v440_v38 = vmul.f32 %v1825_v22, %v1825_v22  ;;  %v441_v39 = vmul.f32 %v1828_v26, %v1828_v26 }
  0xc2   :  { %v1839_v30 = vsub.f32 %v1494_v42, %v284_v19  ;;  %v1842_v8 = vsub.f32 %v1496_v43, %v284_v19  ;;  %v546_v31 = vadd.f32 %v439_v37, %v438_v36 }
  0xc3   :  { %v1845_v5 = vsub.f32 %v1498_v44, %v285_v13  ;;  %v1848_v32 = vsub.f32 %v1500_v45, %v285_v13  ;;  %v175_v33 = vpop.xlane.xlu0 %174  ;;  %v549_v21 = vadd.f32 %v441_v39, %v440_v38 }
  0xc4   :  { %v286_v25 = vmul.f32 0.00390625, %v175_v33  ;;  %544 = vadd.xlane.f32.xlu1 %v543_v15  ;;  %547 = vadd.xlane.f32.xlu0 %v546_v31  ;;  %v178_v27 = vpop.xlane.xlu1 %177  ;;  %v442_v42 = vmul.f32 %v1839_v30, %v1839_v30  ;;  %v443_v43 = vmul.f32 %v1842_v8, %v1842_v8 }
  0xc5   :  { %v287_v19 = vmul.f32 0.00390625, %v178_v27  ;;  %v444_v44 = vmul.f32 %v1845_v5, %v1845_v5  ;;  %v445_v45 = vmul.f32 %v1848_v32, %v1848_v32 }
  0xc6   :  { %v1859_v36 = vsub.f32 %v1506_v48, %v286_v25  ;;  %v1862_v15 = vsub.f32 %v1508_v49, %v286_v25  ;;  %v552_v37 = vadd.f32 %v443_v43, %v442_v42 }
  0xc7   :  { %v1865_v13 = vsub.f32 %v1510_v50, %v287_v19  ;;  %v1868_v38 = vsub.f32 %v1512_v51, %v287_v19  ;;  %v181_v39 = vpop.xlane.xlu0 %180  ;;  %v555_v27 = vadd.f32 %v445_v45, %v444_v44 }
  0xc8   :  { %v288_v31 = vmul.f32 0.00390625, %v181_v39  ;;  %550 = vadd.xlane.f32.xlu1 %v549_v21  ;;  %553 = vadd.xlane.f32.xlu0 %v552_v37  ;;  %v184_v33 = vpop.xlane.xlu1 %183  ;;  %v446_v48 = vmul.f32 %v1859_v36, %v1859_v36  ;;  %v447_v49 = vmul.f32 %v1862_v15, %v1862_v15 }
  0xc9   :  { %v289_v25 = vmul.f32 0.00390625, %v184_v33  ;;  %v448_v50 = vmul.f32 %v1865_v13, %v1865_v13  ;;  %v449_v51 = vmul.f32 %v1868_v38, %v1868_v38 }
  0xca   :  { %v1879_v42 = vsub.f32 %v1518_v54, %v288_v31  ;;  %v1882_v21 = vsub.f32 %v1520_v55, %v288_v31  ;;  %v558_v43 = vadd.f32 %v447_v49, %v446_v48 }
  0xcb   :  { %v1885_v19 = vsub.f32 %v1522_v56, %v289_v25  ;;  %v1888_v44 = vsub.f32 %v1524_v57, %v289_v25  ;;  %v187_v45 = vpop.xlane.xlu0 %186  ;;  %v561_v33 = vadd.f32 %v449_v51, %v448_v50 }
  0xcc   :  { %v290_v37 = vmul.f32 0.00390625, %v187_v45  ;;  %556 = vadd.xlane.f32.xlu1 %v555_v27  ;;  %559 = vadd.xlane.f32.xlu0 %v558_v43  ;;  %v190_v39 = vpop.xlane.xlu1 %189  ;;  %v450_v54 = vmul.f32 %v1879_v42, %v1879_v42  ;;  %v451_v55 = vmul.f32 %v1882_v21, %v1882_v21 }
  0xcd   :  { %v291_v31 = vmul.f32 0.00390625, %v190_v39  ;;  %v452_v56 = vmul.f32 %v1885_v19, %v1885_v19  ;;  %v453_v57 = vmul.f32 %v1888_v44, %v1888_v44 }
  0xce   :  { %v1899_v48 = vsub.f32 %v1530_v60, %v290_v37  ;;  %v1902_v27 = vsub.f32 %v1532_v61, %v290_v37  ;;  %v564_v49 = vadd.f32 %v451_v55, %v450_v54 }
  0xcf   :  { %v1905_v25 = vsub.f32 %v1534_v62, %v291_v31  ;;  %v1908_v50 = vsub.f32 %v1536_v63, %v291_v31  ;;  %v193_v51 = vpop.xlane.xlu0 %192  ;;  %v567_v39 = vadd.f32 %v453_v57, %v452_v56 }
  0xd0   :  { %v292_v43 = vmul.f32 0.00390625, %v193_v51  ;;  %562 = vadd.xlane.f32.xlu1 %v561_v33  ;;  %565 = vadd.xlane.f32.xlu0 %v564_v49  ;;  %v196_v45 = vpop.xlane.xlu1 %195  ;;  %v454_v60 = vmul.f32 %v1899_v48, %v1899_v48  ;;  %v455_v61 = vmul.f32 %v1902_v27, %v1902_v27 }
  0xd1   :  { %v293_v37 = vmul.f32 0.00390625, %v196_v45  ;;  %v456_v62 = vmul.f32 %v1905_v25, %v1905_v25  ;;  %v457_v63 = vmul.f32 %v1908_v50, %v1908_v50 }
  0xd2   :  { %v1919_v54 = vsub.f32 %v1542_v10, %v292_v43  ;;  %v1922_v33 = vsub.f32 %v1544_v11, %v292_v43  ;;  %v570_v55 = vadd.f32 %v455_v61, %v454_v60 }
  0xd3   :  { %v1925_v31 = vsub.f32 %v1546_v16, %v293_v37  ;;  %v1928_v56 = vsub.f32 %v1548_v17, %v293_v37  ;;  %v199_v57 = vpop.xlane.xlu0 %198  ;;  %v573_v45 = vadd.f32 %v457_v63, %v456_v62  ;;  %v2674_v37 = vld [vmem:[#allocation8_spill] sm:$0xff]  ;;  %v2676_v63 = vld [vmem:[#allocation9_spill] sm:$0xff] }
  0xd4   :  { %2668 = vst [vmem:[#allocation56_spill] sm:$0xff] %v1919_v54  ;;  %2669 = vst [vmem:[#allocation57_spill] sm:$0xff] %v1922_v33  ;;  %v294_v49 = vmul.f32 0.00390625, %v199_v57  ;;  %568 = vadd.xlane.f32.xlu1 %v567_v39  ;;  %571 = vadd.xlane.f32.xlu0 %v570_v55  ;;  %v202_v51 = vpop.xlane.xlu1 %201  ;;  %v458_v10 = vmul.f32 %v1919_v54, %v1919_v54  ;;  %v459_v11 = vmul.f32 %v1922_v33, %v1922_v33 }
  0xd5   :  { %2670 = vst [vmem:[#allocation58_spill] sm:$0xff] %v1925_v31  ;;  %2671 = vst [vmem:[#allocation59_spill] sm:$0xff] %v1928_v56  ;;  %v295_v43 = vmul.f32 0.00390625, %v202_v51  ;;  %v460_v16 = vmul.f32 %v1925_v31, %v1925_v31  ;;  %v461_v17 = vmul.f32 %v1928_v56, %v1928_v56 }
  0xd6   :  { %v1939_v60 = vsub.f32 %v1554_v28, %v294_v49  ;;  %v1942_v39 = vsub.f32 %v1556_v29, %v294_v49  ;;  %v576_v61 = vadd.f32 %v459_v11, %v458_v10 }
  0xd7   :  { %v1945_v62 = vsub.f32 %v2674_v37, %v295_v43  ;;  %v1948_v55 = vsub.f32 %v2676_v63, %v295_v43  ;;  %v205_v57 = vpop.xlane.xlu0 %204  ;;  %v579_v33 = vadd.f32 %v461_v17, %v460_v16  ;;  %v2678_v43 = vld [vmem:[#allocation10_spill] sm:$0xff]  ;;  %v2682_v17 = vld [vmem:[#allocation12_spill] sm:$0xff] }
  0xd8   :  { %2672 = vst [vmem:[#allocation60_spill] sm:$0xff] %v1939_v60  ;;  %2673 = vst [vmem:[#allocation61_spill] sm:$0xff] %v1942_v39  ;;  %v296_v51 = vmul.f32 0.00390625, %v205_v57  ;;  %574 = vadd.xlane.f32.xlu1 %v573_v45  ;;  %577 = vadd.xlane.f32.xlu0 %v576_v61  ;;  %v208_v31 = vpop.xlane.xlu1 %207  ;;  %v462_v28 = vmul.f32 %v1939_v60, %v1939_v60  ;;  %v463_v29 = vmul.f32 %v1942_v39, %v1942_v39  ;;  %v2680_v45 = vld [vmem:[#allocation11_spill] sm:$0xff]  ;;  %v2684_v57 = vld [vmem:[#allocation13_spill] sm:$0xff] }
  0xd9   :  { %2675 = vst [vmem:[#allocation8_spill] sm:$0xff] %v1945_v62  ;;  %2677 = vst [vmem:[#allocation9_spill] sm:$0xff] %v1948_v55  ;;  %v297_v49 = vmul.f32 0.00390625, %v208_v31  ;;  %v464_v10 = vmul.f32 %v1945_v62, %v1945_v62  ;;  %v465_v11 = vmul.f32 %v1948_v55, %v1948_v55 }
  0xda   :  { %v1959_v37 = vsub.f32 %v2678_v43, %v296_v51  ;;  %v1962_v61 = vsub.f32 %v2680_v45, %v296_v51  ;;  %v582_v16 = vadd.f32 %v463_v29, %v462_v28 }
  0xdb   :  { %v1965_v63 = vsub.f32 %v2682_v17, %v297_v49  ;;  %v1968_v60 = vsub.f32 %v2684_v57, %v297_v49  ;;  %v211_v31 = vpop.xlane.xlu0 %210  ;;  %v585_v56 = vadd.f32 %v465_v11, %v464_v10  ;;  %v2686_v49 = vld [vmem:[#allocation14_spill] sm:$0xff]  ;;  %v2690_v11 = vld [vmem:[#allocation16_spill] sm:$0xff] }
  0xdc   :  { %2679 = vst [vmem:[#allocation10_spill] sm:$0xff] %v1959_v37  ;;  %2681 = vst [vmem:[#allocation11_spill] sm:$0xff] %v1962_v61  ;;  %v298_v39 = vmul.f32 0.00390625, %v211_v31  ;;  %580 = vadd.xlane.f32.xlu1 %v579_v33  ;;  %583 = vadd.xlane.f32.xlu0 %v582_v16  ;;  %v214_v62 = vpop.xlane.xlu1 %213  ;;  %v466_v43 = vmul.f32 %v1959_v37, %v1959_v37  ;;  %v467_v51 = vmul.f32 %v1962_v61, %v1962_v61  ;;  %v2688_v33 = vld [vmem:[#allocation15_spill] sm:$0xff]  ;;  %v2692_v31 = vld [vmem:[#allocation17_spill] sm:$0xff] }
  0xdd   :  { %2683 = vst [vmem:[#allocation12_spill] sm:$0xff] %v1965_v63  ;;  %2685 = vst [vmem:[#allocation13_spill] sm:$0xff] %v1968_v60  ;;  %v299_v45 = vmul.f32 0.00390625, %v214_v62  ;;  %v468_v28 = vmul.f32 %v1965_v63, %v1965_v63  ;;  %v469_v29 = vmul.f32 %v1968_v60, %v1968_v60 }
  0xde   :  { %v1979_v17 = vsub.f32 %v2686_v49, %v298_v39  ;;  %v1982_v16 = vsub.f32 %v2688_v33, %v298_v39  ;;  %v588_v10 = vadd.f32 %v467_v51, %v466_v43 }
  0xdf   :  { %v1985_v57 = vsub.f32 %v2690_v11, %v299_v45  ;;  %v1988_v37 = vsub.f32 %v2692_v31, %v299_v45  ;;  %v217_v62 = vpop.xlane.xlu0 %216  ;;  %v591_v55 = vadd.f32 %v469_v29, %v468_v28  ;;  %v2694_v45 = vld [vmem:[#allocation18_spill] sm:$0xff]  ;;  %v2698_v29 = vld [vmem:[#allocation20_spill] sm:$0xff] }
  0xe0   :  { %2687 = vst [vmem:[#allocation14_spill] sm:$0xff] %v1979_v17  ;;  %2689 = vst [vmem:[#allocation15_spill] sm:$0xff] %v1982_v16  ;;  %v300_v61 = vmul.f32 0.00390625, %v217_v62  ;;  %586 = vadd.xlane.f32.xlu1 %v585_v56  ;;  %589 = vadd.xlane.f32.xlu0 %v588_v10  ;;  %v220_v63 = vpop.xlane.xlu1 %219  ;;  %v470_v49 = vmul.f32 %v1979_v17, %v1979_v17  ;;  %v471_v39 = vmul.f32 %v1982_v16, %v1982_v16  ;;  %v2696_v56 = vld [vmem:[#allocation19_spill] sm:$0xff]  ;;  %v2700_v62 = vld [vmem:[#allocation21_spill] sm:$0xff] }
  0xe1   :  { %2691 = vst [vmem:[#allocation16_spill] sm:$0xff] %v1985_v57  ;;  %2693 = vst [vmem:[#allocation17_spill] sm:$0xff] %v1988_v37  ;;  %v301_v33 = vmul.f32 0.00390625, %v220_v63  ;;  %v472_v43 = vmul.f32 %v1985_v57, %v1985_v57  ;;  %v473_v51 = vmul.f32 %v1988_v37, %v1988_v37 }
  0xe2   :  { %v1999_v11 = vsub.f32 %v2694_v45, %v300_v61  ;;  %v2002_v10 = vsub.f32 %v2696_v56, %v300_v61  ;;  %v594_v28 = vadd.f32 %v471_v39, %v470_v49 }
  0xe3   :  { %v2005_v31 = vsub.f32 %v2698_v29, %v301_v33  ;;  %v2008_v17 = vsub.f32 %v2700_v62, %v301_v33  ;;  %v223_v63 = vpop.xlane.xlu0 %222  ;;  %v597_v60 = vadd.f32 %v473_v51, %v472_v43  ;;  %v2702_v33 = vld [vmem:[#allocation22_spill] sm:$0xff]  ;;  %v2706_v51 = vld [vmem:[#allocation24_spill] sm:$0xff] }
  0xe4   :  { %2695 = vst [vmem:[#allocation18_spill] sm:$0xff] %v1999_v11  ;;  %2697 = vst [vmem:[#allocation19_spill] sm:$0xff] %v2002_v10  ;;  %v302_v16 = vmul.f32 0.00390625, %v223_v63  ;;  %592 = vadd.xlane.f32.xlu1 %v591_v55  ;;  %595 = vadd.xlane.f32.xlu0 %v594_v28  ;;  %v226_v57 = vpop.xlane.xlu1 %225  ;;  %v474_v45 = vmul.f32 %v1999_v11, %v1999_v11  ;;  %v475_v61 = vmul.f32 %v2002_v10, %v2002_v10  ;;  %v2704_v55 = vld [vmem:[#allocation23_spill] sm:$0xff]  ;;  %v2708_v63 = vld [vmem:[#allocation25_spill] sm:$0xff] }
  0xe5   :  { %2699 = vst [vmem:[#allocation20_spill] sm:$0xff] %v2005_v31  ;;  %2701 = vst [vmem:[#allocation21_spill] sm:$0xff] %v2008_v17  ;;  %v303_v56 = vmul.f32 0.00390625, %v226_v57  ;;  %v476_v49 = vmul.f32 %v2005_v31, %v2005_v31  ;;  %v477_v39 = vmul.f32 %v2008_v17, %v2008_v17 }
  0xe6   :  { %v2019_v29 = vsub.f32 %v2702_v33, %v302_v16  ;;  %v2022_v28 = vsub.f32 %v2704_v55, %v302_v16  ;;  %v600_v43 = vadd.f32 %v475_v61, %v474_v45 }
  0xe7   :  { %v2025_v62 = vsub.f32 %v2706_v51, %v303_v56  ;;  %v2028_v11 = vsub.f32 %v2708_v63, %v303_v56  ;;  %v229_v57 = vpop.xlane.xlu0 %228  ;;  %v603_v37 = vadd.f32 %v477_v39, %v476_v49  ;;  %v2710_v56 = vld [vmem:[#allocation26_spill] sm:$0xff]  ;;  %v2714_v39 = vld [vmem:[#allocation28_spill] sm:$0xff] }
  0xe8   :  { %2703 = vst [vmem:[#allocation22_spill] sm:$0xff] %v2019_v29  ;;  %2705 = vst [vmem:[#allocation23_spill] sm:$0xff] %v2022_v28  ;;  %v304_v10 = vmul.f32 0.00390625, %v229_v57  ;;  %598 = vadd.xlane.f32.xlu1 %v597_v60  ;;  %601 = vadd.xlane.f32.xlu0 %v600_v43  ;;  %v232_v31 = vpop.xlane.xlu1 %231  ;;  %v478_v33 = vmul.f32 %v2019_v29, %v2019_v29  ;;  %v479_v16 = vmul.f32 %v2022_v28, %v2022_v28  ;;  %v2712_v60 = vld [vmem:[#allocation27_spill] sm:$0xff]  ;;  %v2716_v57 = vld [vmem:[#allocation29_spill] sm:$0xff] }
  0xe9   :  { %2707 = vst [vmem:[#allocation24_spill] sm:$0xff] %v2025_v62  ;;  %2709 = vst [vmem:[#allocation25_spill] sm:$0xff] %v2028_v11  ;;  %v305_v55 = vmul.f32 0.00390625, %v232_v31  ;;  %v480_v45 = vmul.f32 %v2025_v62, %v2025_v62  ;;  %v481_v61 = vmul.f32 %v2028_v11, %v2028_v11 }
  0xea   :  { %v2039_v51 = vsub.f32 %v2710_v56, %v304_v10  ;;  %v2042_v43 = vsub.f32 %v2712_v60, %v304_v10  ;;  %v606_v49 = vadd.f32 %v479_v16, %v478_v33 }
  0xeb   :  { %v2045_v63 = vsub.f32 %v2714_v39, %v305_v55  ;;  %v2048_v29 = vsub.f32 %v2716_v57, %v305_v55  ;;  %v235_v31 = vpop.xlane.xlu0 %234  ;;  %v609_v17 = vadd.f32 %v481_v61, %v480_v45  ;;  %v2718_v55 = vld [vmem:[#allocation30_spill] sm:$0xff]  ;;  %v2722_v61 = vld [vmem:[#allocation32_spill] sm:$0xff] }
  0xec   :  { %2711 = vst [vmem:[#allocation26_spill] sm:$0xff] %v2039_v51  ;;  %2713 = vst [vmem:[#allocation27_spill] sm:$0xff] %v2042_v43  ;;  %v306_v28 = vmul.f32 0.00390625, %v235_v31  ;;  %604 = vadd.xlane.f32.xlu1 %v603_v37  ;;  %607 = vadd.xlane.f32.xlu0 %v606_v49  ;;  %v238_v62 = vpop.xlane.xlu1 %237  ;;  %v482_v56 = vmul.f32 %v2039_v51, %v2039_v51  ;;  %v483_v10 = vmul.f32 %v2042_v43, %v2042_v43  ;;  %v2720_v37 = vld [vmem:[#allocation31_spill] sm:$0xff]  ;;  %v2724_v31 = vld [vmem:[#allocation33_spill] sm:$0xff] }
  0xed   :  { %2715 = vst [vmem:[#allocation28_spill] sm:$0xff] %v2045_v63  ;;  %2717 = vst [vmem:[#allocation29_spill] sm:$0xff] %v2048_v29  ;;  %v307_v60 = vmul.f32 0.00390625, %v238_v62  ;;  %v484_v33 = vmul.f32 %v2045_v63, %v2045_v63  ;;  %v485_v16 = vmul.f32 %v2048_v29, %v2048_v29 }
  0xee   :  { %v2059_v39 = vsub.f32 %v2718_v55, %v306_v28  ;;  %v2062_v49 = vsub.f32 %v2720_v37, %v306_v28  ;;  %v612_v45 = vadd.f32 %v483_v10, %v482_v56 }
  0xef   :  { %v2065_v57 = vsub.f32 %v2722_v61, %v307_v60  ;;  %v2068_v51 = vsub.f32 %v2724_v31, %v307_v60  ;;  %v241_v62 = vpop.xlane.xlu0 %240  ;;  %v615_v11 = vadd.f32 %v485_v16, %v484_v33  ;;  %v2726_v60 = vld [vmem:[#allocation34_spill] sm:$0xff]  ;;  %v2730_v16 = vld [vmem:[#allocation36_spill] sm:$0xff] }
  0xf0   :  { %2719 = vst [vmem:[#allocation30_spill] sm:$0xff] %v2059_v39  ;;  %2721 = vst [vmem:[#allocation31_spill] sm:$0xff] %v2062_v49  ;;  %v308_v43 = vmul.f32 0.00390625, %v241_v62  ;;  %610 = vadd.xlane.f32.xlu1 %v609_v17  ;;  %613 = vadd.xlane.f32.xlu0 %v612_v45  ;;  %v244_v63 = vpop.xlane.xlu1 %243  ;;  %v486_v55 = vmul.f32 %v2059_v39, %v2059_v39  ;;  %v487_v28 = vmul.f32 %v2062_v49, %v2062_v49  ;;  %v2728_v17 = vld [vmem:[#allocation35_spill] sm:$0xff]  ;;  %v2732_v62 = vld [vmem:[#allocation37_spill] sm:$0xff] }
  0xf1   :  { %2723 = vst [vmem:[#allocation32_spill] sm:$0xff] %v2065_v57  ;;  %2725 = vst [vmem:[#allocation33_spill] sm:$0xff] %v2068_v51  ;;  %v309_v37 = vmul.f32 0.00390625, %v244_v63  ;;  %v488_v56 = vmul.f32 %v2065_v57, %v2065_v57  ;;  %v489_v10 = vmul.f32 %v2068_v51, %v2068_v51 }
  0xf2   :  { %v2079_v61 = vsub.f32 %v2726_v60, %v308_v43  ;;  %v2082_v45 = vsub.f32 %v2728_v17, %v308_v43  ;;  %v618_v33 = vadd.f32 %v487_v28, %v486_v55 }
  0xf3   :  { %v2085_v31 = vsub.f32 %v2730_v16, %v309_v37  ;;  %v2088_v39 = vsub.f32 %v2732_v62, %v309_v37  ;;  %v247_v63 = vpop.xlane.xlu0 %246  ;;  %v621_v29 = vadd.f32 %v489_v10, %v488_v56  ;;  %v2734_v37 = vld [vmem:[#allocation38_spill] sm:$0xff]  ;;  %v2738_v10 = vld [vmem:[#allocation40_spill] sm:$0xff] }
  0xf4   :  { %2727 = vst [vmem:[#allocation34_spill] sm:$0xff] %v2079_v61  ;;  %2729 = vst [vmem:[#allocation35_spill] sm:$0xff] %v2082_v45  ;;  %v310_v49 = vmul.f32 0.00390625, %v247_v63  ;;  %616 = vadd.xlane.f32.xlu1 %v615_v11  ;;  %619 = vadd.xlane.f32.xlu0 %v618_v33  ;;  %v250_v57 = vpop.xlane.xlu1 %249  ;;  %v490_v60 = vmul.f32 %v2079_v61, %v2079_v61  ;;  %v491_v43 = vmul.f32 %v2082_v45, %v2082_v45  ;;  %v2736_v11 = vld [vmem:[#allocation39_spill] sm:$0xff]  ;;  %v2740_v63 = vld [vmem:[#allocation41_spill] sm:$0xff] }
  0xf5   :  { %2731 = vst [vmem:[#allocation36_spill] sm:$0xff] %v2085_v31  ;;  %2733 = vst [vmem:[#allocation37_spill] sm:$0xff] %v2088_v39  ;;  %v311_v17 = vmul.f32 0.00390625, %v250_v57  ;;  %v492_v55 = vmul.f32 %v2085_v31, %v2085_v31  ;;  %v493_v28 = vmul.f32 %v2088_v39, %v2088_v39 }
  0xf6   :  { %v2099_v16 = vsub.f32 %v2734_v37, %v310_v49  ;;  %v2102_v33 = vsub.f32 %v2736_v11, %v310_v49  ;;  %v624_v56 = vadd.f32 %v491_v43, %v490_v60 }
  0xf7   :  { %v2105_v62 = vsub.f32 %v2738_v10, %v311_v17  ;;  %v2108_v61 = vsub.f32 %v2740_v63, %v311_v17  ;;  %v253_v57 = vpop.xlane.xlu0 %252  ;;  %v627_v51 = vadd.f32 %v493_v28, %v492_v55  ;;  %v2742_v17 = vld [vmem:[#allocation42_spill] sm:$0xff]  ;;  %v2746_v28 = vld [vmem:[#allocation44_spill] sm:$0xff] }
  0xf8   :  { %2735 = vst [vmem:[#allocation38_spill] sm:$0xff] %v2099_v16  ;;  %2737 = vst [vmem:[#allocation39_spill] sm:$0xff] %v2102_v33  ;;  %v312_v45 = vmul.f32 0.00390625, %v253_v57  ;;  %622 = vadd.xlane.f32.xlu1 %v621_v29  ;;  %625 = vadd.xlane.f32.xlu0 %v624_v56  ;;  %v256_v31 = vpop.xlane.xlu1 %255  ;;  %v494_v37 = vmul.f32 %v2099_v16, %v2099_v16  ;;  %v495_v49 = vmul.f32 %v2102_v33, %v2102_v33  ;;  %v2744_v29 = vld [vmem:[#allocation43_spill] sm:$0xff]  ;;  %v2748_v57 = vld [vmem:[#allocation45_spill] sm:$0xff] }
  0xf9   :  { %2739 = vst [vmem:[#allocation40_spill] sm:$0xff] %v2105_v62  ;;  %2741 = vst [vmem:[#allocation41_spill] sm:$0xff] %v2108_v61  ;;  %v313_v11 = vmul.f32 0.00390625, %v256_v31  ;;  %v496_v60 = vmul.f32 %v2105_v62, %v2105_v62  ;;  %v497_v43 = vmul.f32 %v2108_v61, %v2108_v61 }
  0xfa   :  { %v2119_v10 = vsub.f32 %v2742_v17, %v312_v45  ;;  %v2122_v56 = vsub.f32 %v2744_v29, %v312_v45  ;;  %v630_v55 = vadd.f32 %v495_v49, %v494_v37 }
  0xfb   :  { %v2125_v63 = vsub.f32 %v2746_v28, %v313_v11  ;;  %v2128_v16 = vsub.f32 %v2748_v57, %v313_v11  ;;  %v259_v31 = vpop.xlane.xlu0 %258  ;;  %v633_v39 = vadd.f32 %v497_v43, %v496_v60  ;;  %v2750_v11 = vld [vmem:[#allocation46_spill] sm:$0xff]  ;;  %v2754_v43 = vld [vmem:[#allocation48_spill] sm:$0xff] }
  0xfc   :  { %2743 = vst [vmem:[#allocation42_spill] sm:$0xff] %v2119_v10  ;;  %2745 = vst [vmem:[#allocation43_spill] sm:$0xff] %v2122_v56  ;;  %v314_v33 = vmul.f32 0.00390625, %v259_v31  ;;  %628 = vadd.xlane.f32.xlu1 %v627_v51  ;;  %631 = vadd.xlane.f32.xlu0 %v630_v55  ;;  %v262_v62 = vpop.xlane.xlu1 %261  ;;  %v498_v17 = vmul.f32 %v2119_v10, %v2119_v10  ;;  %v499_v45 = vmul.f32 %v2122_v56, %v2122_v56  ;;  %v2752_v51 = vld [vmem:[#allocation47_spill] sm:$0xff]  ;;  %v2756_v31 = vld [vmem:[#allocation49_spill] sm:$0xff] }
  0xfd   :  { %2747 = vst [vmem:[#allocation44_spill] sm:$0xff] %v2125_v63  ;;  %2749 = vst [vmem:[#allocation45_spill] sm:$0xff] %v2128_v16  ;;  %v315_v29 = vmul.f32 0.00390625, %v262_v62  ;;  %v500_v37 = vmul.f32 %v2125_v63, %v2125_v63  ;;  %v501_v49 = vmul.f32 %v2128_v16, %v2128_v16 }
  0xfe   :  { %v2139_v28 = vsub.f32 %v2750_v11, %v314_v33  ;;  %v2142_v55 = vsub.f32 %v2752_v51, %v314_v33  ;;  %v636_v60 = vadd.f32 %v499_v45, %v498_v17 }
  0xff   :  { %v2145_v57 = vsub.f32 %v2754_v43, %v315_v29  ;;  %v2148_v10 = vsub.f32 %v2756_v31, %v315_v29  ;;  %v265_v62 = vpop.xlane.xlu0 %264  ;;  %v639_v61 = vadd.f32 %v501_v49, %v500_v37  ;;  %v2762_v43 = vld [vmem:[#allocation51_spill] sm:$0xff] }
 0x100   :  { %2751 = vst [vmem:[#allocation46_spill] sm:$0xff] %v2139_v28  ;;  %2753 = vst [vmem:[#allocation47_spill] sm:$0xff] %v2142_v55  ;;  %v316_v56 = vmul.f32 0.00390625, %v265_v62  ;;  %634 = vadd.xlane.f32.xlu1 %v633_v39  ;;  %637 = vadd.xlane.f32.xlu0 %v636_v60  ;;  %v268_v63 = vpop.xlane.xlu1 %267  ;;  %v502_v11 = vmul.f32 %v2139_v28, %v2139_v28  ;;  %v503_v33 = vmul.f32 %v2142_v55, %v2142_v55  ;;  %v2759_v39 = vld [vmem:[#allocation50_spill] sm:$0xff] }
 0x101   :  { %2755 = vst [vmem:[#allocation48_spill] sm:$0xff] %v2145_v57  ;;  %2757 = vst [vmem:[#allocation49_spill] sm:$0xff] %v2148_v10  ;;  %v317_v51 = vmul.f32 0.00390625, %v268_v63  ;;  %v504_v17 = vmul.f32 %v2145_v57, %v2145_v57  ;;  %v505_v45 = vmul.f32 %v2148_v10, %v2148_v10 }
 0x102   :  { %v2159_v29 = vsub.f32 %v1686_v59, %v316_v56  ;;  %v2162_v60 = vsub.f32 %v2759_v39, %v316_v56  ;;  %v642_v37 = vadd.f32 %v503_v33, %v502_v11 }
 0x103   :  { %v2165_v49 = vsub.f32 %v1690_v53, %v317_v51  ;;  %v2168_v31 = vsub.f32 %v2762_v43, %v317_v51  ;;  %v645_v63 = vadd.f32 %v505_v45, %v504_v17  ;;  %v897_v17 = vlaneseq }
 0x104   :  { %2758 = vst [vmem:[#allocation62_spill] sm:$0xff] %v2159_v29  ;;  %2760 = vst [vmem:[#allocation50_spill] sm:$0xff] %v2162_v60  ;;  %640 = vadd.xlane.f32.xlu1 %v639_v61  ;;  %643 = vadd.xlane.f32.xlu0 %v642_v37  ;;  %v506_v62 = vmul.f32 %v2159_v29, %v2159_v29  ;;  %v507_v59 = vmul.f32 %v2162_v60, %v2162_v60 }
 0x105   :  { %2761 = vst [vmem:[#allocation63_spill] sm:$0xff] %v2165_v49  ;;  %2763 = vst [vmem:[#allocation51_spill] sm:$0xff] %v2168_v31  ;;  %v508_v56 = vmul.f32 %v2165_v49, %v2165_v49  ;;  %v509_v11 = vmul.f32 %v2168_v31, %v2168_v31  ;;  %v898_v29 = vshrl.u32 %v897_v17, 7 }
 0x106   :  { %v648_v53 = vadd.f32 %v507_v59, %v506_v62 }
 0x107   :  { %v651_v33 = vadd.f32 %v509_v11, %v508_v56  ;;  %v899_v59 = vsub.s32 0, %v898_v29  ;;  %v903_v56 = vsub.s32 1, %v898_v29  ;;  %v798_v11 = vld [vmem:[%s2517_s1] sm:$0x3]  ;;  %s1374_s1 = smov [#allocation5]  }
 0x108   :  { %646 = vadd.xlane.f32.xlu1 %v645_v63  ;;  %649 = vadd.xlane.f32.xlu0 %v648_v53 }
 0x10c   :  { %652 = vadd.xlane.f32.xlu1 %v651_v33 }
 0x139   :  { %v512_v61 = vpop.xlane.xlu0 %511 }
 0x13a   :  { %v654_v51 = vmul.f32 0.00390625, %v512_v61 }
 0x13c   :  { %v702_v45 = vadd.f32 1e-12, %v654_v51 }
 0x13d   :  { %v515_v39 = vpop.xlane.xlu1 %514  ;;  %v518_v37 = vpop.xlane.xlu0 %517 }
 0x13e   :  { %1227 = vrsqrt.f32 %v702_v45  ;;  %v655_v43 = vmul.f32 0.00390625, %v515_v39  ;;  %v656_v60 = vmul.f32 0.00390625, %v518_v37 }
 0x140   :  { %v703_v10 = vadd.f32 1e-12, %v655_v43  ;;  %v704_v49 = vadd.f32 1e-12, %v656_v60  ;;  %v799_v60 = vld [vmem:[%s2518_s2] sm:$0x3] }
 0x141   :  { %v521_v57 = vpop.xlane.xlu1 %520  ;;  %v524_v55 = vpop.xlane.xlu0 %523  ;;  %v2188_v39 = vrot.slane %v799_v60, %v899_v59  ;;  %v2190_v37 = vrot.slane %v799_v60, %v903_v56  ;;  %v2764_v43 = vld [vmem:[#allocation52_spill] sm:$0xff]  ;;  %s1211_s2 = sshll.u32 %s1374_s1, 4  ;;  %s1212_s2 = int_to_ptr.vmem [resolvable:$true] %s1211_s2 }
 0x142   :  { %1229 = vrsqrt.f32 %v703_v10  ;;  %v657_v62 = vmul.f32 0.00390625, %v521_v57  ;;  %v658_v63 = vmul.f32 0.00390625, %v524_v55  ;;  %v2184_v57 = vrot.slane %v798_v11, %v899_v59  ;;  %s1345_s29 = scalar_lea.vmem %s1212_s2, 12288  ;;  %p1350_p9 = scmp.lt.s32.totalorder %s1212_s2, %s1212_s2 }
 0x143   :  { %1231 = vrsqrt.f32 %v704_v49  ;;  %v2186_v55 = vrot.slane %v798_v11, %v903_v56  ;;  %p1346_p8 = scmp.ne.s32.totalorder %s1212_s2, %s1345_s29  ;;  %p1351_p10 = scmp.lt.s32.totalorder %s1345_s29, %s1345_s29 }
 0x144   :  { %v705_v53 = vadd.f32 1e-12, %v657_v62  ;;  %v706_v33 = vadd.f32 1e-12, %v658_v63  ;;  %v2765_v63 = vld [vmem:[#allocation53_spill] sm:$0xff] }
 0x145   :  { %v527_v61 = vpop.xlane.xlu1 %526  ;;  %v530_v51 = vpop.xlane.xlu0 %529  ;;  %p1352_p11 = por %p1351_p10, %p1350_p9 }
 0x146   :  { %1233 = vrsqrt.f32 %v705_v53  ;;  %v659_v17 = vmul.f32 0.00390625, %v527_v61  ;;  %v660_v10 = vmul.f32 0.00390625, %v530_v51 }
 0x147   :  { %1235 = vrsqrt.f32 %v706_v33  ;;  %p1353_p12 = pnand %p1352_p11, %p1346_p8 }
 0x148   :  { %v1228_v29 = vpop.eup %1227  ;;  %v707_v49 = vadd.f32 1e-12, %v659_v17  ;;  %v708_v45 = vadd.f32 1e-12, %v660_v10 }
 0x149   :  { %v800_v62 = vmul.f32 %v1228_v29, %v2764_v43  ;;  %v801_v31 = vmul.f32 %v1228_v29, %v2765_v63  ;;  %v533_v28 = vpop.xlane.xlu1 %532  ;;  %v536_v53 = vpop.xlane.xlu0 %535  ;;  %v2766_v63 = vld [vmem:[#allocation54_spill] sm:$0xff] }
 0x14a   :  { %1237 = vrsqrt.f32 %v707_v49  ;;  %v661_v61 = vmul.f32 0.00390625, %v533_v28  ;;  %v662_v51 = vmul.f32 0.00390625, %v536_v53 }
 0x14b   :  { %v907_v11 = vmul.f32 %v2184_v57, %v800_v62  ;;  %v908_v33 = vmul.f32 %v2186_v55, %v801_v31  ;;  %1239 = vrsqrt.f32 %v708_v45  ;;  %v2767_v62 = vld [vmem:[#allocation55_spill] sm:$0xff] }
 0x14c   :  { %v1230_v17 = vpop.eup %1229  ;;  %v709_v10 = vadd.f32 1e-12, %v661_v61  ;;  %v710_v59 = vadd.f32 1e-12, %v662_v51 }
 0x14d   :  { %v1232_v16 = vpop.eup %1231  ;;  %v1014_v56 = vadd.f32 %v2188_v39, %v907_v11  ;;  %v1015_v60 = vadd.f32 %v2190_v37, %v908_v33  ;;  %v802_v29 = vmul.f32 %v1230_v17, %v1719_v23  ;;  %v803_v43 = vmul.f32 %v1230_v17, %v1722_v4  ;;  %v539_v49 = vpop.xlane.xlu1 %538 }
 0x14e   :  { %v542_v28 = vpop.xlane.xlu0 %541  ;;  %v804_v53 = vmul.f32 %v1232_v16, %v2766_v63  ;;  %v805_v54 = vmul.f32 %v1232_v16, %v2767_v62  ;;  %1241 = vrsqrt.f32 %v709_v10  ;;  %v663_v31 = vmul.f32 0.00390625, %v539_v49 }
 0x14f   :  { %1110 = vst [vmem:[#allocation5] sm:$0xff] %v1014_v56  ;;  %1111 = vst [vmem:[#allocation5 + $0x8] sm:$0xff] %v1015_v60  ;;  %v909_v45 = vmul.f32 %v2184_v57, %v802_v29  ;;  %v910_v61 = vmul.f32 %v2186_v55, %v803_v43  ;;  %1243 = vrsqrt.f32 %v710_v59  ;;  %v664_v51 = vmul.f32 0.00390625, %v542_v28 }
 0x150   :  { %v1234_v11 = vpop.eup %1233  ;;  %v911_v23 = vmul.f32 %v2184_v57, %v804_v53  ;;  %v912_v4 = vmul.f32 %v2186_v55, %v805_v54  ;;  %v711_v33 = vadd.f32 1e-12, %v663_v31 }
 0x151   :  { %v1236_v17 = vpop.eup %1235  ;;  %v1016_v63 = vadd.f32 %v2188_v39, %v909_v45  ;;  %v1017_v16 = vadd.f32 %v2190_v37, %v910_v61  ;;  %v806_v10 = vmul.f32 %v1234_v11, %v1725_v7  ;;  %v807_v56 = vmul.f32 %v1234_v11, %v1728_v40  ;;  %v545_v60 = vpop.xlane.xlu1 %544 }
 0x152   :  { %v548_v29 = vpop.xlane.xlu0 %547  ;;  %v1018_v59 = vadd.f32 %v2188_v39, %v911_v23  ;;  %v1019_v43 = vadd.f32 %v2190_v37, %v912_v4  ;;  %v808_v49 = vmul.f32 %v1236_v17, %v1739_v9  ;;  %v809_v54 = vmul.f32 %v1236_v17, %v1742_v35 }
 0x153   :  { %1112 = vst [vmem:[#allocation5 + $0x10] sm:$0xff] %v1016_v63  ;;  %1113 = vst [vmem:[#allocation5 + $0x18] sm:$0xff] %v1017_v16  ;;  %v913_v28 = vmul.f32 %v2184_v57, %v806_v10  ;;  %v914_v53 = vmul.f32 %v2186_v55, %v807_v56  ;;  %1245 = vrsqrt.f32 %v711_v33  ;;  %v712_v7 = vadd.f32 1e-12, %v664_v51 }
 0x154   :  { %v1238_v62 = vpop.eup %1237  ;;  %1114 = vst [vmem:[#allocation5 + $0x20] sm:$0xff] %v1018_v59  ;;  %1115 = vst [vmem:[#allocation5 + $0x28] sm:$0xff] %v1019_v43  ;;  %v915_v40 = vmul.f32 %v2184_v57, %v808_v49  ;;  %v916_v31 = vmul.f32 %v2186_v55, %v809_v54  ;;  %v665_v45 = vmul.f32 0.00390625, %v545_v60  ;;  %v666_v61 = vmul.f32 0.00390625, %v548_v29 }
 0x155   :  { %v1240_v9 = vpop.eup %1239  ;;  %v1020_v35 = vadd.f32 %v2188_v39, %v913_v28  ;;  %v1021_v11 = vadd.f32 %v2190_v37, %v914_v53  ;;  %v810_v23 = vmul.f32 %v1238_v62, %v1745_v0  ;;  %v811_v4 = vmul.f32 %v1238_v62, %v1748_v1  ;;  %v551_v33 = vpop.xlane.xlu1 %550 }
 0x156   :  { %v554_v51 = vpop.xlane.xlu0 %553  ;;  %v1022_v17 = vadd.f32 %v2188_v39, %v915_v40  ;;  %v1023_v63 = vadd.f32 %v2190_v37, %v916_v31  ;;  %v812_v16 = vmul.f32 %v1240_v9, %v1759_v58  ;;  %v813_v10 = vmul.f32 %v1240_v9, %v1762_v41 }
 0x157   :  { %1116 = vst [vmem:[#allocation5 + $0x30] sm:$0xff] %v1020_v35  ;;  %1117 = vst [vmem:[#allocation5 + $0x38] sm:$0xff] %v1021_v11  ;;  %v917_v56 = vmul.f32 %v2184_v57, %v810_v23  ;;  %v918_v60 = vmul.f32 %v2186_v55, %v811_v4  ;;  %1247 = vrsqrt.f32 %v712_v7  ;;  %v713_v0 = vadd.f32 1e-12, %v665_v45 }
 0x158   :  { %v1242_v29 = vpop.eup %1241  ;;  %1118 = vst [vmem:[#allocation5 + $0x40] sm:$0xff] %v1022_v17  ;;  %1119 = vst [vmem:[#allocation5 + $0x48] sm:$0xff] %v1023_v63  ;;  %v919_v1 = vmul.f32 %v2184_v57, %v812_v16  ;;  %v920_v59 = vmul.f32 %v2186_v55, %v813_v10  ;;  %v714_v43 = vadd.f32 1e-12, %v666_v61  ;;  %v667_v49 = vmul.f32 0.00390625, %v551_v33 }
 0x159   :  { %v1244_v58 = vpop.eup %1243  ;;  %v1024_v41 = vadd.f32 %v2188_v39, %v917_v56  ;;  %v1025_v54 = vadd.f32 %v2190_v37, %v918_v60  ;;  %v814_v28 = vmul.f32 %v1242_v29, %v1765_v6  ;;  %v815_v53 = vmul.f32 %v1242_v29, %v1768_v52  ;;  %v557_v7 = vpop.xlane.xlu1 %556 }
 0x15a   :  { %v560_v62 = vpop.xlane.xlu0 %559  ;;  %v1026_v40 = vadd.f32 %v2188_v39, %v919_v1  ;;  %v1027_v31 = vadd.f32 %v2190_v37, %v920_v59  ;;  %v816_v45 = vmul.f32 %v1244_v58, %v1779_v12  ;;  %v817_v61 = vmul.f32 %v1244_v58, %v1782_v3 }
 0x15b   :  { %1120 = vst [vmem:[#allocation5 + $0x50] sm:$0xff] %v1024_v41  ;;  %1121 = vst [vmem:[#allocation5 + $0x58] sm:$0xff] %v1025_v54  ;;  %v921_v9 = vmul.f32 %v2184_v57, %v814_v28  ;;  %v922_v35 = vmul.f32 %v2186_v55, %v815_v53  ;;  %1249 = vrsqrt.f32 %v713_v0  ;;  %v715_v6 = vadd.f32 1e-12, %v667_v49 }
 0x15c   :  { %1122 = vst [vmem:[#allocation5 + $0x60] sm:$0xff] %v1026_v40  ;;  %1123 = vst [vmem:[#allocation5 + $0x68] sm:$0xff] %v1027_v31  ;;  %v923_v52 = vmul.f32 %v2184_v57, %v816_v45  ;;  %v924_v11 = vmul.f32 %v2186_v55, %v817_v61  ;;  %1251 = vrsqrt.f32 %v714_v43  ;;  %v668_v23 = vmul.f32 0.00390625, %v554_v51 }
 0x15d   :  { %v1246_v4 = vpop.eup %1245  ;;  %v1028_v12 = vadd.f32 %v2188_v39, %v921_v9  ;;  %v1029_v3 = vadd.f32 %v2190_v37, %v922_v35  ;;  %1253 = vrsqrt.f32 %v715_v6  ;;  %v669_v33 = vmul.f32 0.00390625, %v557_v7  ;;  %v563_v17 = vpop.xlane.xlu1 %562 }
 0x15e   :  { %v566_v63 = vpop.xlane.xlu0 %565  ;;  %v1030_v16 = vadd.f32 %v2188_v39, %v923_v52  ;;  %v1031_v10 = vadd.f32 %v2190_v37, %v924_v11  ;;  %v818_v56 = vmul.f32 %v1246_v4, %v1785_v34  ;;  %v819_v60 = vmul.f32 %v1246_v4, %v1788_v14 }
 0x15f   :  { %1124 = vst [vmem:[#allocation5 + $0x70] sm:$0xff] %v1028_v12  ;;  %1125 = vst [vmem:[#allocation5 + $0x78] sm:$0xff] %v1029_v3  ;;  %v716_v51 = vadd.f32 1e-12, %v668_v23  ;;  %v717_v0 = vadd.f32 1e-12, %v669_v33 }
 0x160   :  { %v670_v29 = vmul.f32 0.00390625, %v560_v62  ;;  %v671_v1 = vmul.f32 0.00390625, %v563_v17  ;;  %1126 = vst [vmem:[#allocation5 + $0x80] sm:$0xff] %v1030_v16  ;;  %1127 = vst [vmem:[#allocation5 + $0x88] sm:$0xff] %v1031_v10  ;;  %v925_v59 = vmul.f32 %v2184_v57, %v818_v56  ;;  %v926_v43 = vmul.f32 %v2186_v55, %v819_v60 }
 0x161   :  { %v672_v49 = vmul.f32 0.00390625, %v566_v63  ;;  %v1248_v58 = vpop.eup %1247  ;;  %1255 = vrsqrt.f32 %v716_v51  ;;  %v569_v34 = vpop.xlane.xlu1 %568 }
 0x162   :  { %v718_v41 = vadd.f32 1e-12, %v670_v29  ;;  %v719_v54 = vadd.f32 1e-12, %v671_v1  ;;  %v572_v28 = vpop.xlane.xlu0 %571  ;;  %v1032_v14 = vadd.f32 %v2188_v39, %v925_v59  ;;  %v1033_v53 = vadd.f32 %v2190_v37, %v926_v43 }
 0x163   :  { %v820_v7 = vmul.f32 %v1248_v58, %v1799_v18  ;;  %v821_v62 = vmul.f32 %v1248_v58, %v1802_v47  ;;  %1257 = vrsqrt.f32 %v717_v0  ;;  %v720_v40 = vadd.f32 1e-12, %v672_v49 }
 0x164   :  { %v673_v31 = vmul.f32 0.00390625, %v569_v34  ;;  %v674_v45 = vmul.f32 0.00390625, %v572_v28  ;;  %1128 = vst [vmem:[#allocation5 + $0x90] sm:$0xff] %v1032_v14  ;;  %1129 = vst [vmem:[#allocation5 + $0x98] sm:$0xff] %v1033_v53  ;;  %1259 = vrsqrt.f32 %v718_v41 }
 0x165   :  { %v927_v61 = vmul.f32 %v2184_v57, %v820_v7  ;;  %v928_v9 = vmul.f32 %v2186_v55, %v821_v62  ;;  %v1250_v35 = vpop.eup %1249  ;;  %1261 = vrsqrt.f32 %v719_v54  ;;  %v575_v11 = vpop.xlane.xlu1 %574 }
 0x166   :  { %v721_v6 = vadd.f32 1e-12, %v673_v31  ;;  %v722_v52 = vadd.f32 1e-12, %v674_v45  ;;  %v578_v23 = vpop.xlane.xlu0 %577  ;;  %v1252_v18 = vpop.eup %1251  ;;  %v822_v12 = vmul.f32 %v1250_v35, %v1805_v2  ;;  %v823_v3 = vmul.f32 %v1250_v35, %v1808_v20 }
 0x167   :  { %v1034_v47 = vadd.f32 %v2188_v39, %v927_v61  ;;  %v1035_v4 = vadd.f32 %v2190_v37, %v928_v9  ;;  %v1254_v33 = vpop.eup %1253  ;;  %v824_v17 = vmul.f32 %v1252_v18, %v1819_v24  ;;  %v825_v63 = vmul.f32 %v1252_v18, %v1822_v46 }
 0x168   :  { %1263 = vrsqrt.f32 %v720_v40  ;;  %v675_v16 = vmul.f32 0.00390625, %v575_v11  ;;  %v929_v10 = vmul.f32 %v2184_v57, %v822_v12  ;;  %v930_v56 = vmul.f32 %v2186_v55, %v823_v3 }
 0x169   :  { %1130 = vst [vmem:[#allocation5 + $0xa0] sm:$0xff] %v1034_v47  ;;  %1131 = vst [vmem:[#allocation5 + $0xa8] sm:$0xff] %v1035_v4  ;;  %v826_v60 = vmul.f32 %v1254_v33, %v1825_v22  ;;  %v827_v51 = vmul.f32 %v1254_v33, %v1828_v26  ;;  %v931_v2 = vmul.f32 %v2184_v57, %v824_v17  ;;  %1265 = vrsqrt.f32 %v721_v6  ;;  %v581_v0 = vpop.xlane.xlu1 %580 }
 0x16a   :  { %v932_v20 = vmul.f32 %v2186_v55, %v825_v63  ;;  %v723_v24 = vadd.f32 1e-12, %v675_v16  ;;  %v584_v46 = vpop.xlane.xlu0 %583  ;;  %v1036_v29 = vadd.f32 %v2188_v39, %v929_v10  ;;  %v1037_v1 = vadd.f32 %v2190_v37, %v930_v56 }
 0x16b   :  { %v933_v59 = vmul.f32 %v2184_v57, %v826_v60  ;;  %v934_v43 = vmul.f32 %v2186_v55, %v827_v51  ;;  %v1256_v49 = vpop.eup %1255  ;;  %v1038_v22 = vadd.f32 %v2188_v39, %v931_v2  ;;  %1267 = vrsqrt.f32 %v722_v52 }
 0x16c   :  { %v1039_v26 = vadd.f32 %v2190_v37, %v932_v20  ;;  %v676_v58 = vmul.f32 0.00390625, %v578_v23  ;;  %1132 = vst [vmem:[#allocation5 + $0xb0] sm:$0xff] %v1036_v29  ;;  %1133 = vst [vmem:[#allocation5 + $0xb8] sm:$0xff] %v1037_v1  ;;  %v828_v34 = vmul.f32 %v1256_v49, %v1839_v30  ;;  %v829_v28 = vmul.f32 %v1256_v49, %v1842_v8 }
 0x16d   :  { %v1040_v41 = vadd.f32 %v2188_v39, %v933_v59  ;;  %v1041_v54 = vadd.f32 %v2190_v37, %v934_v43  ;;  %v1258_v14 = vpop.eup %1257  ;;  %1134 = vst [vmem:[#allocation5 + $0xc0] sm:$0xff] %v1038_v22  ;;  %1269 = vrsqrt.f32 %v723_v24  ;;  %v677_v7 = vmul.f32 0.00390625, %v581_v0  ;;  %v587_v40 = vpop.xlane.xlu1 %586 }
 0x16e   :  { %1135 = vst [vmem:[#allocation5 + $0xc8] sm:$0xff] %v1039_v26  ;;  %v724_v53 = vadd.f32 1e-12, %v676_v58  ;;  %v678_v62 = vmul.f32 0.00390625, %v584_v46  ;;  %v2278_v31 = vpop.xlane.xlu0 %589  ;;  %v1260_v45 = vpop.eup %1259  ;;  %v935_v61 = vmul.f32 %v2184_v57, %v828_v34  ;;  %v936_v9 = vmul.f32 %v2186_v55, %v829_v28 }
 0x16f   :  { %1136 = vst [vmem:[#allocation5 + $0xd0] sm:$0xff] %v1040_v41  ;;  %1137 = vst [vmem:[#allocation5 + $0xd8] sm:$0xff] %v1041_v54  ;;  %v830_v30 = vmul.f32 %v1258_v14, %v1845_v5  ;;  %v831_v8 = vmul.f32 %v1258_v14, %v1848_v32  ;;  %v1262_v35 = vpop.eup %1261  ;;  %v832_v6 = vmul.f32 %v1260_v45, %v1859_v36  ;;  %v725_v11 = vadd.f32 1e-12, %v677_v7 }
 0x170   :  { %v833_v52 = vmul.f32 %v1260_v45, %v1862_v15  ;;  %1271 = vrsqrt.f32 %v724_v53  ;;  %v1042_v23 = vadd.f32 %v2188_v39, %v935_v61  ;;  %v1043_v18 = vadd.f32 %v2190_v37, %v936_v9 }
 0x171   :  { %v937_v47 = vmul.f32 %v2184_v57, %v830_v30  ;;  %v938_v4 = vmul.f32 %v2186_v55, %v831_v8  ;;  %v939_v5 = vmul.f32 %v2184_v57, %v832_v6  ;;  %v834_v3 = vmul.f32 %v1262_v35, %v1865_v13  ;;  %v2294_v15 = vpop.xlane.xlu1 %592  ;;  %v2768_v30 = vld [vmem:[#allocation56_spill] sm:$0xff]  ;;  %v2769_v8 = vld [vmem:[#allocation57_spill] sm:$0xff] }
 0x172   :  { %v1264_v12 = vpop.eup %1263  ;;  %v940_v32 = vmul.f32 %v2186_v55, %v833_v52  ;;  %v835_v36 = vmul.f32 %v1262_v35, %v1868_v38  ;;  %v2296_v33 = vpop.xlane.xlu0 %595  ;;  %1138 = vst [vmem:[#allocation5 + $0xe0] sm:$0xff] %v1042_v23  ;;  %1139 = vst [vmem:[#allocation5 + $0xe8] sm:$0xff] %v1043_v18  ;;  %1273 = vrsqrt.f32 %v725_v11  ;;  %v726_v29 = vadd.f32 1e-12, %v678_v62 }
 0x173   :  { %v1044_v17 = vadd.f32 %v2188_v39, %v937_v47  ;;  %v1045_v63 = vadd.f32 %v2190_v37, %v938_v4  ;;  %v836_v16 = vmul.f32 %v1264_v12, %v1879_v42  ;;  %v837_v10 = vmul.f32 %v1264_v12, %v1882_v21  ;;  %v1266_v56 = vpop.eup %1265 }
 0x174   :  { %v1046_v60 = vadd.f32 %v2188_v39, %v939_v5  ;;  %v1047_v13 = vadd.f32 %v2190_v37, %v940_v32  ;;  %v941_v38 = vmul.f32 %v2184_v57, %v834_v3  ;;  %v942_v51 = vmul.f32 %v2186_v55, %v835_v36 }
 0x175   :  { %1140 = vst [vmem:[#allocation5 + $0xf0] sm:$0xff] %v1044_v17  ;;  %1141 = vst [vmem:[#allocation5 + $0xf8] sm:$0xff] %v1045_v63  ;;  %v943_v2 = vmul.f32 %v2184_v57, %v836_v16  ;;  %v944_v20 = vmul.f32 %v2186_v55, %v837_v10  ;;  %v838_v24 = vmul.f32 %v1266_v56, %v1885_v19  ;;  %v1268_v21 = vpop.eup %1267  ;;  %v599_v1 = vpop.xlane.xlu1 %598  ;;  %1275 = vrsqrt.f32 %v726_v29  ;;  %v2773_v29 = vld [vmem:[#allocation61_spill] sm:$0xff] }
 0x176   :  { %v839_v42 = vmul.f32 %v1266_v56, %v1888_v44  ;;  %1142 = vst [vmem:[#allocation5 + $0x100] sm:$0xff] %v1046_v60  ;;  %1143 = vst [vmem:[#allocation5 + $0x108] sm:$0xff] %v1047_v13  ;;  %v1048_v0 = vadd.f32 %v2188_v39, %v941_v38  ;;  %v1049_v46 = vadd.f32 %v2190_v37, %v942_v51  ;;  %v602_v59 = vpop.xlane.xlu0 %601  ;;  %v679_v41 = vmul.f32 0.00390625, %v587_v40  ;;  %v2770_v56 = vld [vmem:[#allocation58_spill] sm:$0xff] }
 0x177   :  { %v1050_v43 = vadd.f32 %v2188_v39, %v943_v2  ;;  %v1051_v49 = vadd.f32 %v2190_v37, %v944_v20  ;;  %v945_v22 = vmul.f32 %v2184_v57, %v838_v24  ;;  %v1270_v44 = vpop.eup %1269  ;;  %v840_v26 = vmul.f32 %v1268_v21, %v1899_v48 }
 0x178   :  { %v946_v19 = vmul.f32 %v2186_v55, %v839_v42  ;;  %1144 = vst [vmem:[#allocation5 + $0x110] sm:$0xff] %v1048_v0  ;;  %1145 = vst [vmem:[#allocation5 + $0x118] sm:$0xff] %v1049_v46  ;;  %v841_v58 = vmul.f32 %v1268_v21, %v1902_v27  ;;  %v842_v28 = vmul.f32 %v1270_v44, %v1905_v25  ;;  %v727_v48 = vadd.f32 1e-12, %v679_v41  ;;  %v2772_v0 = vld [vmem:[#allocation60_spill] sm:$0xff] }
 0x179   :  { %1146 = vst [vmem:[#allocation5 + $0x120] sm:$0xff] %v1050_v43  ;;  %1147 = vst [vmem:[#allocation5 + $0x128] sm:$0xff] %v1051_v49  ;;  %v1052_v54 = vadd.f32 %v2188_v39, %v945_v22  ;;  %v843_v14 = vmul.f32 %v1270_v44, %v1908_v50  ;;  %v947_v7 = vmul.f32 %v2184_v57, %v840_v26  ;;  %v680_v27 = vmul.f32 0.00390625, %v2278_v31  ;;  %v605_v45 = vpop.xlane.xlu1 %604 }
 0x17a   :  { %v1053_v34 = vadd.f32 %v2190_v37, %v946_v19  ;;  %v1272_v53 = vpop.eup %1271  ;;  %v948_v62 = vmul.f32 %v2186_v55, %v841_v58  ;;  %v608_v40 = vpop.xlane.xlu0 %607  ;;  %v949_v61 = vmul.f32 %v2184_v57, %v842_v28  ;;  %1277 = vrsqrt.f32 %v727_v48 }
 0x17b   :  { %1148 = vst [vmem:[#allocation5 + $0x130] sm:$0xff] %v1052_v54  ;;  %v950_v9 = vmul.f32 %v2186_v55, %v843_v14  ;;  %v844_v25 = vmul.f32 %v1272_v53, %v2768_v30  ;;  %v845_v50 = vmul.f32 %v1272_v53, %v2769_v8  ;;  %v1054_v35 = vadd.f32 %v2188_v39, %v947_v7 }
 0x17c   :  { %1149 = vst [vmem:[#allocation5 + $0x138] sm:$0xff] %v1053_v34  ;;  %v1055_v6 = vadd.f32 %v2190_v37, %v948_v62  ;;  %v728_v52 = vadd.f32 1e-12, %v680_v27  ;;  %v1056_v31 = vadd.f32 %v2188_v39, %v949_v61  ;;  %v681_v47 = vmul.f32 0.00390625, %v2294_v15  ;;  %v1274_v17 = vpop.eup %1273  ;;  %v2771_v15 = vld [vmem:[#allocation59_spill] sm:$0xff]  ;;  %v2774_v62 = vld [vmem:[#allocation8_spill] sm:$0xff] }
 0x17d   :  { %v1057_v11 = vadd.f32 %v2190_v37, %v950_v9  ;;  %v951_v23 = vmul.f32 %v2184_v57, %v844_v25  ;;  %v952_v18 = vmul.f32 %v2186_v55, %v845_v50  ;;  %1150 = vst [vmem:[#allocation5 + $0x140] sm:$0xff] %v1054_v35  ;;  %v682_v4 = vmul.f32 0.00390625, %v2296_v33  ;;  %v611_v5 = vpop.xlane.xlu1 %610  ;;  %v2775_v27 = vld [vmem:[#allocation9_spill] sm:$0xff]  ;;  %v2776_v50 = vld [vmem:[#allocation10_spill] sm:$0xff] }
 0x17e   :  { %1151 = vst [vmem:[#allocation5 + $0x148] sm:$0xff] %v1055_v6  ;;  %1279 = vrsqrt.f32 %v728_v52  ;;  %v683_v12 = vmul.f32 0.00390625, %v599_v1  ;;  %v614_v32 = vpop.xlane.xlu0 %613  ;;  %1152 = vst [vmem:[#allocation5 + $0x150] sm:$0xff] %v1056_v31  ;;  %v729_v63 = vadd.f32 1e-12, %v681_v47  ;;  %v684_v10 = vmul.f32 0.00390625, %v602_v59 }
 0x17f   :  { %1153 = vst [vmem:[#allocation5 + $0x158] sm:$0xff] %v1057_v11  ;;  %v1058_v3 = vadd.f32 %v2188_v39, %v951_v23  ;;  %v1059_v36 = vadd.f32 %v2190_v37, %v952_v18  ;;  %v730_v16 = vadd.f32 1e-12, %v682_v4  ;;  %v846_v60 = vmul.f32 %v1274_v17, %v2770_v56  ;;  %v1276_v33 = vpop.eup %1275  ;;  %v2777_v6 = vld [vmem:[#allocation11_spill] sm:$0xff]  ;;  %v2778_v56 = vld [vmem:[#allocation12_spill] sm:$0xff] }
 0x180   :  { %v847_v13 = vmul.f32 %v1274_v17, %v2771_v15  ;;  %1281 = vrsqrt.f32 %v729_v63  ;;  %v731_v38 = vadd.f32 1e-12, %v683_v12  ;;  %v685_v51 = vmul.f32 0.00390625, %v605_v45  ;;  %v2779_v15 = vld [vmem:[#allocation13_spill] sm:$0xff] }
 0x181   :  { %1154 = vst [vmem:[#allocation5 + $0x160] sm:$0xff] %v1058_v3  ;;  %1155 = vst [vmem:[#allocation5 + $0x168] sm:$0xff] %v1059_v36  ;;  %v686_v2 = vmul.f32 0.00390625, %v608_v40  ;;  %v617_v20 = vpop.xlane.xlu1 %616  ;;  %v953_v42 = vmul.f32 %v2184_v57, %v846_v60  ;;  %v848_v46 = vmul.f32 %v1276_v33, %v2772_v0  ;;  %v849_v1 = vmul.f32 %v1276_v33, %v2773_v29  ;;  %v2780_v0 = vld [vmem:[#allocation14_spill] sm:$0xff]  ;;  %v2781_v29 = vld [vmem:[#allocation15_spill] sm:$0xff] }
 0x182   :  { %v620_v24 = vpop.xlane.xlu0 %619  ;;  %v954_v21 = vmul.f32 %v2186_v55, %v847_v13  ;;  %1283 = vrsqrt.f32 %v730_v16  ;;  %v732_v59 = vadd.f32 1e-12, %v684_v10  ;;  %v687_v43 = vmul.f32 0.00390625, %v611_v5 }
 0x183   :  { %v688_v49 = vmul.f32 0.00390625, %v614_v32  ;;  %v1060_v22 = vadd.f32 %v2188_v39, %v953_v42  ;;  %v955_v44 = vmul.f32 %v2184_v57, %v848_v46  ;;  %v956_v26 = vmul.f32 %v2186_v55, %v849_v1 }
 0x184   :  { %v1061_v19 = vadd.f32 %v2190_v37, %v954_v21  ;;  %v1278_v58 = vpop.eup %1277  ;;  %1285 = vrsqrt.f32 %v731_v38  ;;  %v733_v41 = vadd.f32 1e-12, %v685_v51  ;;  %v734_v54 = vadd.f32 1e-12, %v686_v2 }
 0x185   :  { %v689_v34 = vmul.f32 0.00390625, %v617_v20  ;;  %v623_v28 = vpop.xlane.xlu1 %622  ;;  %1156 = vst [vmem:[#allocation5 + $0x170] sm:$0xff] %v1060_v22  ;;  %v1062_v53 = vadd.f32 %v2188_v39, %v955_v44  ;;  %v1063_v7 = vadd.f32 %v2190_v37, %v956_v26  ;;  %v850_v48 = vmul.f32 %v1278_v58, %v2774_v62 }
 0x186   :  { %v626_v14 = vpop.xlane.xlu0 %625  ;;  %1157 = vst [vmem:[#allocation5 + $0x178] sm:$0xff] %v1061_v19  ;;  %v851_v45 = vmul.f32 %v1278_v58, %v2775_v27  ;;  %1287 = vrsqrt.f32 %v732_v59  ;;  %v735_v61 = vadd.f32 1e-12, %v687_v43  ;;  %v736_v9 = vadd.f32 1e-12, %v688_v49 }
 0x187   :  { %v690_v30 = vmul.f32 0.00390625, %v620_v24  ;;  %1158 = vst [vmem:[#allocation5 + $0x180] sm:$0xff] %v1062_v53  ;;  %1159 = vst [vmem:[#allocation5 + $0x188] sm:$0xff] %v1063_v7  ;;  %v957_v25 = vmul.f32 %v2184_v57, %v850_v48  ;;  %1289 = vrsqrt.f32 %v733_v41  ;;  %v737_v31 = vadd.f32 1e-12, %v689_v34  ;;  %v2784_v48 = vld [vmem:[#allocation18_spill] sm:$0xff] }
 0x188   :  { %v1280_v40 = vpop.eup %1279  ;;  %v958_v8 = vmul.f32 %v2186_v55, %v851_v45  ;;  %v691_v11 = vmul.f32 0.00390625, %v623_v28  ;;  %v692_v23 = vmul.f32 0.00390625, %v626_v14  ;;  %1291 = vrsqrt.f32 %v734_v54  ;;  %v2782_v54 = vld [vmem:[#allocation16_spill] sm:$0xff]  ;;  %v2783_v28 = vld [vmem:[#allocation17_spill] sm:$0xff]  ;;  %v2785_v45 = vld [vmem:[#allocation19_spill] sm:$0xff] }
 0x189   :  { %v852_v35 = vmul.f32 %v1280_v40, %v2776_v50  ;;  %v853_v52 = vmul.f32 %v1280_v40, %v2777_v6  ;;  %v629_v18 = vpop.xlane.xlu1 %628  ;;  %v1064_v4 = vadd.f32 %v2188_v39, %v957_v25  ;;  %v738_v36 = vadd.f32 1e-12, %v690_v30  ;;  %v2786_v6 = vld [vmem:[#allocation20_spill] sm:$0xff] }
 0x18a   :  { %v632_v47 = vpop.xlane.xlu0 %631  ;;  %v1065_v12 = vadd.f32 %v2190_v37, %v958_v8  ;;  %v1282_v3 = vpop.eup %1281  ;;  %v693_v17 = vmul.f32 0.00390625, %v629_v18  ;;  %1293 = vrsqrt.f32 %v735_v61  ;;  %v739_v38 = vadd.f32 1e-12, %v691_v11 }
 0x18b   :  { %v959_v5 = vmul.f32 %v2184_v57, %v852_v35  ;;  %v960_v32 = vmul.f32 %v2186_v55, %v853_v52  ;;  %v694_v63 = vmul.f32 0.00390625, %v632_v47  ;;  %1160 = vst [vmem:[#allocation5 + $0x190] sm:$0xff] %v1064_v4  ;;  %v854_v60 = vmul.f32 %v1282_v3, %v2778_v56 }
 0x18c   :  { %1161 = vst [vmem:[#allocation5 + $0x198] sm:$0xff] %v1065_v12  ;;  %v855_v13 = vmul.f32 %v1282_v3, %v2779_v15  ;;  %v1284_v33 = vpop.eup %1283  ;;  %v740_v51 = vadd.f32 1e-12, %v692_v23  ;;  %v2365_v2 = vadd.f32 1e-12, %v693_v17  ;;  %1295 = vrsqrt.f32 %v736_v9 }
 0x18d   :  { %v1066_v16 = vadd.f32 %v2188_v39, %v959_v5  ;;  %v1067_v10 = vadd.f32 %v2190_v37, %v960_v32  ;;  %v635_v20 = vpop.xlane.xlu1 %634  ;;  %v961_v42 = vmul.f32 %v2184_v57, %v854_v60  ;;  %v856_v46 = vmul.f32 %v1284_v33, %v2780_v0 }
 0x18e   :  { %v638_v24 = vpop.xlane.xlu0 %637  ;;  %v962_v21 = vmul.f32 %v2186_v55, %v855_v13  ;;  %v857_v1 = vmul.f32 %v1284_v33, %v2781_v29  ;;  %v1286_v59 = vpop.eup %1285  ;;  %v2371_v43 = vadd.f32 1e-12, %v694_v63  ;;  %v695_v49 = vmul.f32 0.00390625, %v635_v20  ;;  %v2788_v63 = vld [vmem:[#allocation22_spill] sm:$0xff]  ;;  %v2790_v33 = vld [vmem:[#allocation24_spill] sm:$0xff]  ;;  %v2791_v20 = vld [vmem:[#allocation25_spill] sm:$0xff] }
 0x18f   :  { %1162 = vst [vmem:[#allocation5 + $0x1a0] sm:$0xff] %v1066_v16  ;;  %1163 = vst [vmem:[#allocation5 + $0x1a8] sm:$0xff] %v1067_v10  ;;  %v696_v22 = vmul.f32 0.00390625, %v638_v24  ;;  %v1068_v19 = vadd.f32 %v2188_v39, %v961_v42  ;;  %v963_v26 = vmul.f32 %v2184_v57, %v856_v46  ;;  %v858_v34 = vmul.f32 %v1286_v59, %v2782_v54  ;;  %v2789_v10 = vld [vmem:[#allocation23_spill] sm:$0xff] }
 0x190   :  { %v1069_v44 = vadd.f32 %v2190_v37, %v962_v21  ;;  %v964_v58 = vmul.f32 %v2186_v55, %v857_v1  ;;  %v1288_v41 = vpop.eup %1287  ;;  %v859_v14 = vmul.f32 %v1286_v59, %v2783_v28  ;;  %1297 = vrsqrt.f32 %v737_v31  ;;  %v2787_v31 = vld [vmem:[#allocation21_spill] sm:$0xff]  ;;  %v2792_v1 = vld [vmem:[#allocation26_spill] sm:$0xff] }
 0x191   :  { %v2379_v53 = vadd.f32 1e-12, %v695_v49  ;;  %1164 = vst [vmem:[#allocation5 + $0x1b0] sm:$0xff] %v1068_v19  ;;  %v1070_v7 = vadd.f32 %v2188_v39, %v963_v26  ;;  %v860_v27 = vmul.f32 %v1288_v41, %v2784_v48  ;;  %v861_v40 = vmul.f32 %v1288_v41, %v2785_v45  ;;  %v641_v61 = vpop.xlane.xlu1 %640  ;;  %v1290_v9 = vpop.eup %1289  ;;  %v2793_v49 = vld [vmem:[#allocation27_spill] sm:$0xff]  ;;  %v2795_v48 = vld [vmem:[#allocation29_spill] sm:$0xff] }
 0x192   :  { %1165 = vst [vmem:[#allocation5 + $0x1b8] sm:$0xff] %v1069_v44  ;;  %v1071_v62 = vadd.f32 %v2190_v37, %v964_v58  ;;  %v965_v30 = vmul.f32 %v2184_v57, %v858_v34  ;;  %v966_v25 = vmul.f32 %v2186_v55, %v859_v14  ;;  %1299 = vrsqrt.f32 %v738_v36  ;;  %v1292_v23 = vpop.eup %1291  ;;  %v644_v36 = vpop.xlane.xlu0 %643 }
 0x193   :  { %v2387_v8 = vadd.f32 1e-12, %v696_v22  ;;  %1166 = vst [vmem:[#allocation5 + $0x1c0] sm:$0xff] %v1070_v7  ;;  %v967_v50 = vmul.f32 %v2184_v57, %v860_v27  ;;  %v968_v35 = vmul.f32 %v2186_v55, %v861_v40  ;;  %v862_v52 = vmul.f32 %v1290_v9, %v2786_v6  ;;  %v2794_v7 = vld [vmem:[#allocation28_spill] sm:$0xff] }
 0x194   :  { %1167 = vst [vmem:[#allocation5 + $0x1c8] sm:$0xff] %v1071_v62  ;;  %v863_v11 = vmul.f32 %v1290_v9, %v2787_v31  ;;  %v1072_v18 = vadd.f32 %v2188_v39, %v965_v30  ;;  %v1073_v47 = vadd.f32 %v2190_v37, %v966_v25  ;;  %1301 = vrsqrt.f32 %v739_v38  ;;  %v1294_v17 = vpop.eup %1293  ;;  %v2797_v30 = vld [vmem:[#allocation31_spill] sm:$0xff] }
 0x195   :  { %v697_v4 = vmul.f32 0.00390625, %v641_v61  ;;  %v1074_v12 = vadd.f32 %v2188_v39, %v967_v50  ;;  %v1075_v5 = vadd.f32 %v2190_v37, %v968_v35  ;;  %v969_v32 = vmul.f32 %v2184_v57, %v862_v52  ;;  %v647_v19 = vpop.xlane.xlu1 %646  ;;  %v2796_v61 = vld [vmem:[#allocation30_spill] sm:$0xff] }
 0x196   :  { %v970_v3 = vmul.f32 %v2186_v55, %v863_v11  ;;  %1168 = vst [vmem:[#allocation5 + $0x1d0] sm:$0xff] %v1072_v18  ;;  %1169 = vst [vmem:[#allocation5 + $0x1d8] sm:$0xff] %v1073_v47  ;;  %v864_v16 = vmul.f32 %v1292_v23, %v2788_v63  ;;  %v865_v56 = vmul.f32 %v1292_v23, %v2789_v10  ;;  %1303 = vrsqrt.f32 %v740_v51  ;;  %v1296_v42 = vpop.eup %1295  ;;  %v650_v50 = vpop.xlane.xlu0 %649  ;;  %v2798_v23 = vld [vmem:[#allocation32_spill] sm:$0xff]  ;;  %v2799_v47 = vld [vmem:[#allocation33_spill] sm:$0xff] }
 0x197   :  { %v745_v60 = vadd.f32 1e-12, %v697_v4  ;;  %1170 = vst [vmem:[#allocation5 + $0x1e0] sm:$0xff] %v1074_v12  ;;  %1171 = vst [vmem:[#allocation5 + $0x1e8] sm:$0xff] %v1075_v5  ;;  %v1076_v15 = vadd.f32 %v2188_v39, %v969_v32  ;;  %v866_v38 = vmul.f32 %v1294_v17, %v2790_v33  ;;  %v867_v24 = vmul.f32 %v1294_v17, %v2791_v20 }
 0x198   :  { %v1077_v13 = vadd.f32 %v2190_v37, %v970_v3  ;;  %v971_v21 = vmul.f32 %v2184_v57, %v864_v16  ;;  %v972_v0 = vmul.f32 %v2186_v55, %v865_v56  ;;  %1305 = vrsqrt.f32 %v2365_v2  ;;  %v2800_v56 = vld [vmem:[#allocation34_spill] sm:$0xff] }
 0x199   :  { %v698_v46 = vmul.f32 0.00390625, %v644_v36  ;;  %1172 = vst [vmem:[#allocation5 + $0x1f0] sm:$0xff] %v1076_v15  ;;  %v973_v51 = vmul.f32 %v2184_v57, %v866_v38  ;;  %v974_v29 = vmul.f32 %v2186_v55, %v867_v24  ;;  %v868_v59 = vmul.f32 %v1296_v42, %v2792_v1  ;;  %v653_v16 = vpop.xlane.xlu1 %652  ;;  %v2802_v24 = vld [vmem:[#allocation36_spill] sm:$0xff] }
 0x19a   :  { %1173 = vst [vmem:[#allocation5 + $0x1f8] sm:$0xff] %v1077_v13  ;;  %v869_v22 = vmul.f32 %v1296_v42, %v2793_v49  ;;  %v1298_v44 = vpop.eup %1297  ;;  %v1078_v26 = vadd.f32 %v2188_v39, %v971_v21  ;;  %v1079_v58 = vadd.f32 %v2190_v37, %v972_v0  ;;  %1307 = vrsqrt.f32 %v2371_v43  ;;  %v2801_v13 = vld [vmem:[#allocation35_spill] sm:$0xff]  ;;  %v2803_v21 = vld [vmem:[#allocation37_spill] sm:$0xff] }
 0x19b   :  { %v746_v2 = vadd.f32 1e-12, %v698_v46  ;;  %v1080_v41 = vadd.f32 %v2188_v39, %v973_v51  ;;  %v1081_v54 = vadd.f32 %v2190_v37, %v974_v29  ;;  %v975_v34 = vmul.f32 %v2184_v57, %v868_v59 }
 0x19c   :  { %v976_v28 = vmul.f32 %v2186_v55, %v869_v22  ;;  %v1300_v14 = vpop.eup %1299  ;;  %1174 = vst [vmem:[#allocation5 + $0x200] sm:$0xff] %v1078_v26  ;;  %1175 = vst [vmem:[#allocation5 + $0x208] sm:$0xff] %v1079_v58  ;;  %v870_v62 = vmul.f32 %v1298_v44, %v2794_v7  ;;  %v871_v27 = vmul.f32 %v1298_v44, %v2795_v48  ;;  %1309 = vrsqrt.f32 %v2379_v53  ;;  %v2804_v22 = vld [vmem:[#allocation38_spill] sm:$0xff]  ;;  %v2805_v44 = vld [vmem:[#allocation39_spill] sm:$0xff] }
 0x19d   :  { %v699_v45 = vmul.f32 0.00390625, %v647_v19  ;;  %1176 = vst [vmem:[#allocation5 + $0x210] sm:$0xff] %v1080_v41  ;;  %1177 = vst [vmem:[#allocation5 + $0x218] sm:$0xff] %v1081_v54  ;;  %v1082_v43 = vadd.f32 %v2188_v39, %v975_v34  ;;  %v872_v9 = vmul.f32 %v1300_v14, %v2796_v61  ;;  %v873_v25 = vmul.f32 %v1300_v14, %v2797_v30  ;;  %v2806_v48 = vld [vmem:[#allocation40_spill] sm:$0xff] }
 0x19e   :  { %v1083_v40 = vadd.f32 %v2190_v37, %v976_v28  ;;  %v1302_v35 = vpop.eup %1301  ;;  %v977_v6 = vmul.f32 %v2184_v57, %v870_v62  ;;  %v978_v52 = vmul.f32 %v2186_v55, %v871_v27  ;;  %1311 = vrsqrt.f32 %v2387_v8 }
 0x19f   :  { %v747_v53 = vadd.f32 1e-12, %v699_v45  ;;  %1178 = vst [vmem:[#allocation5 + $0x220] sm:$0xff] %v1082_v43  ;;  %v979_v31 = vmul.f32 %v2184_v57, %v872_v9  ;;  %v980_v11 = vmul.f32 %v2186_v55, %v873_v25  ;;  %v874_v18 = vmul.f32 %v1302_v35, %v2798_v23  ;;  %v2807_v45 = vld [vmem:[#allocation41_spill] sm:$0xff]  ;;  %v2808_v9 = vld [vmem:[#allocation42_spill] sm:$0xff]  ;;  %v2809_v25 = vld [vmem:[#allocation43_spill] sm:$0xff] }
 0x1a0   :  { %1179 = vst [vmem:[#allocation5 + $0x228] sm:$0xff] %v1083_v40  ;;  %v875_v4 = vmul.f32 %v1302_v35, %v2799_v47  ;;  %v1304_v12 = vpop.eup %1303  ;;  %v1084_v5 = vadd.f32 %v2188_v39, %v977_v6  ;;  %v1085_v32 = vadd.f32 %v2190_v37, %v978_v52  ;;  %1313 = vrsqrt.f32 %v745_v60 }
 0x1a1   :  { %v700_v3 = vmul.f32 0.00390625, %v650_v50  ;;  %v1086_v8 = vadd.f32 %v2188_v39, %v979_v31  ;;  %v1087_v36 = vadd.f32 %v2190_v37, %v980_v11  ;;  %v981_v17 = vmul.f32 %v2184_v57, %v874_v18  ;;  %v2810_v11 = vld [vmem:[#allocation44_spill] sm:$0xff]  ;;  %v2811_v18 = vld [vmem:[#allocation45_spill] sm:$0xff] }
 0x1a2   :  { %v982_v63 = vmul.f32 %v2186_v55, %v875_v4  ;;  %v1306_v10 = vpop.eup %1305  ;;  %1180 = vst [vmem:[#allocation5 + $0x230] sm:$0xff] %v1084_v5  ;;  %1181 = vst [vmem:[#allocation5 + $0x238] sm:$0xff] %v1085_v32  ;;  %v876_v15 = vmul.f32 %v1304_v12, %v2800_v56  ;;  %v877_v33 = vmul.f32 %v1304_v12, %v2801_v13  ;;  %1315 = vrsqrt.f32 %v746_v2 }
 0x1a3   :  { %v748_v38 = vadd.f32 1e-12, %v700_v3  ;;  %1182 = vst [vmem:[#allocation5 + $0x240] sm:$0xff] %v1086_v8  ;;  %1183 = vst [vmem:[#allocation5 + $0x248] sm:$0xff] %v1087_v36  ;;  %v1088_v60 = vadd.f32 %v2188_v39, %v981_v17  ;;  %v878_v42 = vmul.f32 %v1306_v10, %v2802_v24  ;;  %v879_v0 = vmul.f32 %v1306_v10, %v2803_v21  ;;  %v2813_v10 = vld [vmem:[#allocation47_spill] sm:$0xff] }
 0x1a4   :  { %v1089_v20 = vadd.f32 %v2190_v37, %v982_v63  ;;  %v1308_v46 = vpop.eup %1307  ;;  %v983_v51 = vmul.f32 %v2184_v57, %v876_v15  ;;  %v984_v29 = vmul.f32 %v2186_v55, %v877_v33  ;;  %1317 = vrsqrt.f32 %v747_v53  ;;  %v2812_v63 = vld [vmem:[#allocation46_spill] sm:$0xff]  ;;  %v2814_v33 = vld [vmem:[#allocation48_spill] sm:$0xff] }
 0x1a5   :  { %v701_v1 = vmul.f32 0.00390625, %v653_v16  ;;  %1184 = vst [vmem:[#allocation5 + $0x250] sm:$0xff] %v1088_v60  ;;  %v985_v59 = vmul.f32 %v2184_v57, %v878_v42  ;;  %v986_v49 = vmul.f32 %v2186_v55, %v879_v0  ;;  %v880_v19 = vmul.f32 %v1308_v46, %v2804_v22  ;;  %v2815_v60 = vld [vmem:[#allocation49_spill] sm:$0xff] }
 0x1a6   :  { %1185 = vst [vmem:[#allocation5 + $0x258] sm:$0xff] %v1089_v20  ;;  %v881_v26 = vmul.f32 %v1308_v46, %v2805_v44  ;;  %v1310_v58 = vpop.eup %1309  ;;  %v1090_v2 = vadd.f32 %v2188_v39, %v983_v51  ;;  %v1091_v41 = vadd.f32 %v2190_v37, %v984_v29  ;;  %1319 = vrsqrt.f32 %v748_v38  ;;  %v2816_v51 = vld [vmem:[#allocation62_spill] sm:$0xff] }
 0x1a7   :  { %v749_v54 = vadd.f32 1e-12, %v701_v1  ;;  %v1092_v34 = vadd.f32 %v2188_v39, %v985_v59  ;;  %v1093_v28 = vadd.f32 %v2190_v37, %v986_v49  ;;  %v987_v14 = vmul.f32 %v2184_v57, %v880_v19  ;;  %v2817_v1 = vld [vmem:[#allocation50_spill] sm:$0xff] }
 0x1a8   :  { %v988_v7 = vmul.f32 %v2186_v55, %v881_v26  ;;  %v1312_v62 = vpop.eup %1311  ;;  %1186 = vst [vmem:[#allocation5 + $0x260] sm:$0xff] %v1090_v2  ;;  %1187 = vst [vmem:[#allocation5 + $0x268] sm:$0xff] %v1091_v41  ;;  %v882_v27 = vmul.f32 %v1310_v58, %v2806_v48  ;;  %v883_v43 = vmul.f32 %v1310_v58, %v2807_v45  ;;  %v2818_v41 = vld [vmem:[#allocation63_spill] sm:$0xff] }
 0x1a9   :  { %1321 = vrsqrt.f32 %v749_v54  ;;  %1188 = vst [vmem:[#allocation5 + $0x270] sm:$0xff] %v1092_v34  ;;  %1189 = vst [vmem:[#allocation5 + $0x278] sm:$0xff] %v1093_v28  ;;  %v1094_v40 = vadd.f32 %v2188_v39, %v987_v14  ;;  %v884_v30 = vmul.f32 %v1312_v62, %v2808_v9  ;;  %v885_v50 = vmul.f32 %v1312_v62, %v2809_v25  ;;  %v2819_v34 = vld [vmem:[#allocation51_spill] sm:$0xff] }
 0x1aa   :  { %v1095_v61 = vadd.f32 %v2190_v37, %v988_v7  ;;  %v1314_v35 = vpop.eup %1313  ;;  %v989_v6 = vmul.f32 %v2184_v57, %v882_v27  ;;  %v990_v52 = vmul.f32 %v2186_v55, %v883_v43 }
 0x1ab   :  { %1190 = vst [vmem:[#allocation5 + $0x280] sm:$0xff] %v1094_v40  ;;  %v991_v53 = vmul.f32 %v2184_v57, %v884_v30  ;;  %v992_v31 = vmul.f32 %v2186_v55, %v885_v50  ;;  %v886_v23 = vmul.f32 %v1314_v35, %v2810_v11  ;;  %v887_v47 = vmul.f32 %v1314_v35, %v2811_v18 }
 0x1ac   :  { %1191 = vst [vmem:[#allocation5 + $0x288] sm:$0xff] %v1095_v61  ;;  %v1316_v4 = vpop.eup %1315  ;;  %v1096_v12 = vadd.f32 %v2188_v39, %v989_v6  ;;  %v1097_v5 = vadd.f32 %v2190_v37, %v990_v52 }
 0x1ad   :  { %v1098_v32 = vadd.f32 %v2188_v39, %v991_v53  ;;  %v1099_v3 = vadd.f32 %v2190_v37, %v992_v31  ;;  %v993_v8 = vmul.f32 %v2184_v57, %v886_v23  ;;  %v994_v36 = vmul.f32 %v2186_v55, %v887_v47 }
 0x1ae   :  { %v1318_v17 = vpop.eup %1317  ;;  %1192 = vst [vmem:[#allocation5 + $0x290] sm:$0xff] %v1096_v12  ;;  %1193 = vst [vmem:[#allocation5 + $0x298] sm:$0xff] %v1097_v5  ;;  %v888_v16 = vmul.f32 %v1316_v4, %v2812_v63  ;;  %v889_v56 = vmul.f32 %v1316_v4, %v2813_v10 }
 0x1af   :  { %1194 = vst [vmem:[#allocation5 + $0x2a0] sm:$0xff] %v1098_v32  ;;  %1195 = vst [vmem:[#allocation5 + $0x2a8] sm:$0xff] %v1099_v3  ;;  %v1100_v15 = vadd.f32 %v2188_v39, %v993_v8  ;;  %v1101_v13 = vadd.f32 %v2190_v37, %v994_v36  ;;  %v890_v38 = vmul.f32 %v1318_v17, %v2814_v33 }
 0x1b0   :  { %v891_v20 = vmul.f32 %v1318_v17, %v2815_v60  ;;  %v1320_v24 = vpop.eup %1319  ;;  %v995_v42 = vmul.f32 %v2184_v57, %v888_v16  ;;  %v996_v21 = vmul.f32 %v2186_v55, %v889_v56 }
 0x1b1   :  { %1196 = vst [vmem:[#allocation5 + $0x2b0] sm:$0xff] %v1100_v15  ;;  %1197 = vst [vmem:[#allocation5 + $0x2b8] sm:$0xff] %v1101_v13  ;;  %v997_v0 = vmul.f32 %v2184_v57, %v890_v38  ;;  %v892_v29 = vmul.f32 %v1320_v24, %v2816_v51  ;;  %v893_v59 = vmul.f32 %v1320_v24, %v2817_v1 }
 0x1b2   :  { %v998_v46 = vmul.f32 %v2186_v55, %v891_v20  ;;  %v1102_v22 = vadd.f32 %v2188_v39, %v995_v42  ;;  %v1103_v19 = vadd.f32 %v2190_v37, %v996_v21 }
 0x1b3   :  { %v1322_v49 = vpop.eup %1321  ;;  %v1104_v44 = vadd.f32 %v2188_v39, %v997_v0  ;;  %v999_v58 = vmul.f32 %v2184_v57, %v892_v29  ;;  %v1000_v2 = vmul.f32 %v2186_v55, %v893_v59 }
 0x1b4   :  { %v1105_v26 = vadd.f32 %v2190_v37, %v998_v46  ;;  %1198 = vst [vmem:[#allocation5 + $0x2c0] sm:$0xff] %v1102_v22  ;;  %1199 = vst [vmem:[#allocation5 + $0x2c8] sm:$0xff] %v1103_v19  ;;  %v894_v54 = vmul.f32 %v1322_v49, %v2818_v41  ;;  %v895_v28 = vmul.f32 %v1322_v49, %v2819_v34 }
 0x1b5   :  { %1200 = vst [vmem:[#allocation5 + $0x2d0] sm:$0xff] %v1104_v44  ;;  %v1106_v14 = vadd.f32 %v2188_v39, %v999_v58  ;;  %v1107_v7 = vadd.f32 %v2190_v37, %v1000_v2 }
 0x1b6   :  { %1201 = vst [vmem:[#allocation5 + $0x2d8] sm:$0xff] %v1105_v26  ;;  %v1001_v62 = vmul.f32 %v2184_v57, %v894_v54  ;;  %v1002_v48 = vmul.f32 %v2186_v55, %v895_v28 }
 0x1b7   :  { %1202 = vst [vmem:[#allocation5 + $0x2e0] sm:$0xff] %v1106_v14  ;;  %1203 = vst [vmem:[#allocation5 + $0x2e8] sm:$0xff] %v1107_v7 }
 0x1b8   :  { %v1108_v27 = vadd.f32 %v2188_v39, %v1001_v62  ;;  %v1109_v45 = vadd.f32 %v2190_v37, %v1002_v48 }
 0x1ba   :  { %1204 = vst [vmem:[#allocation5 + $0x2f0] sm:$0xff] %v1108_v27  ;;  %1205 = vst [vmem:[#allocation5 + $0x2f8] sm:$0xff] %v1109_v45 }
 0x1bb   :  { %1356 = shalt.err (!%p1353_p12)
}
 0x1bc   :  { %s1357_s5 = scalar_lea.hbm %s2519_s3, 12288 }
 0x1bd   :  { %p1358_p13 = scmp.ne.s32.totalorder %s2519_s3, %s1357_s5  ;;  %p1361_p0 = scmp.lt.u32.totalorder %s1357_s5, %s2519_s3 }
 0x1bf   :  { %p1363_p1 = pnand %p1361_p0, %p1358_p13 }
 0x1c1   :  { %1366 = shalt.err (!%p1363_p1)
}
 0x1c2   :  { %1217 = dma.vmem_to_hbm [thread:$0]  %s1212_s2, 12288, %s2519_s3, [#allocation4], %s1372_s22, %s1372_s22, %s1373_s23  }
 0x1c3   :  { %1369 = dma.done.wait [#allocation4], 12288  }
 0x1c4   :  { %1370 = vsyncadd [#allocation4], 4294955008 }
 0x1c5   :  { %1221 = vsyncpa [#allocation3], 1 }
 0x1c6   :  { %1222 = vsyncpa [#allocation4], 1 }

</bundles_post_ra>
